<compile_context>
chip_gen: v6e
topology: v6e:2x2x1
jax: 0.10.0
libtpu: 0.0.40
codegen_flags: <defaults>
</compile_context>

<pallas_src>
import functools

import numpy as np

import jax
import jax.numpy as jnp
from jax.experimental import pallas as pl
from jax.experimental.pallas import tpu as pltpu

_BN_EPS = 1e-5


# -----------------------------------------------------------------------------------------
# Host-side parameter preprocessing (one-time; keep out of the per-step hot path).
# -----------------------------------------------------------------------------------------
def _band_conv_weights(w_hwio, width):
    """HWIO (3,3,Cin,Cout) -> three block-banded matrices B[kh], shape (width*Cin, width*Cout).

    B[kh][wi*Cin + c, wo*Cout + co] = w[kh, wi - wo + 1, c, co] for |wi - wo| <= 1, else 0.
    The kw taps and the 1-pixel zero pad along W are folded into the band structure, so the
    kernel's conv is just  rows(N*H, width*Cin) @ B[kh]  accumulated over kh.
    """
    w = np.asarray(jax.device_get(w_hwio), np.float32)          # (3, 3, Cin, Cout)
    _, _, cin, cout = w.shape
    b = np.zeros((3, width * cin, width * cout), np.float32)
    for kh in range(3):
        for wo in range(width):
            for kw in range(3):
                wi = wo + kw - 1
                if 0 <= wi < width:
                    b[kh, wi * cin:(wi + 1) * cin, wo * cout:(wo + 1) * cout] = w[kh, kw]
    return jnp.asarray(b, jnp.bfloat16)


def _tile_padded_bytes(shape, dtype):
    """VMEM bytes of `shape` after (sublane, 128)-tile padding of the last two dims."""
    itemsize = np.dtype(dtype).itemsize
    sublane = {4: 8, 2: 16, 1: 32}.get(itemsize, 8)
    lead = 1
    for d in shape[:-2]:
        lead *= d
    rows = -(-shape[-2] // sublane) * sublane
    cols = -(-shape[-1] // 128) * 128
    return lead * rows * cols * itemsize


# -----------------------------------------------------------------------------------------
# In-kernel helpers (everything operates on the lane-dense (rows, W*C) layout).
# -----------------------------------------------------------------------------------------
def _fold_w(row, width, chans):
    """(1, width*chans) -> (1, chans): sum the `width` channel-blocks along the lane axis."""
    acc = row[:, 0:chans]
    for w in range(1, width):
        acc = acc + row[:, w * chans:(w + 1) * chans]
    return acc


def _bcast_w(row, width):
    """(1, chans) -> (1, width*chans): repeat along lanes so lane w*chans + c == row[c]."""
    return jnp.concatenate([row] * width, axis=-1)


def _bn_relu_dense(y, gamma, beta, width, chans, inv_count):
    """Training-mode BatchNorm (batch stats, biased var) folded to one scale/shift FMA + ReLU.

    y: (rows, width*chans) f32 in (w, c) lane layout.  Single-pass stats: sum / sum-of-squares
    accumulated in f32 (var = E[y^2] - mean^2, clamped at 0 against cancellation).
    """
    ssum = jnp.sum(y, axis=0, keepdims=True)              # (1, width*chans)  sublane reduce
    ssq = jnp.sum(y * y, axis=0, keepdims=True)
    mean = _fold_w(ssum, width, chans) * inv_count        # (1, chans)
    ex2 = _fold_w(ssq, width, chans) * inv_count
    var = jnp.maximum(ex2 - mean * mean, 0.0)
    scale = gamma * jax.lax.rsqrt(var + _BN_EPS)
    shift = beta - mean * scale
    return jnp.maximum(y * _bcast_w(scale, width) + _bcast_w(shift, width), 0.0)


# -----------------------------------------------------------------------------------------
# Fused kernel
# -----------------------------------------------------------------------------------------
def _double_conv_kernel(x_ref, b1_ref, b2_ref, g1_ref, be1_ref, g2_ref, be2_ref,
                        out_ref, pad1_ref, pad2_ref, *, H, W, Cout):
    """Fused (conv3x3 => BN(batch stats) => ReLU) x 2, everything lane-dense, all in VMEM.

    x_ref   : (N, H, W*Cin)        bf16  lane-dense input rows
    b1_ref  : (3, W*Cin,  W*Cout)  bf16  block-banded stage-1 conv weights (one per kh)
    b2_ref  : (3, W*Cout, W*Cout)  bf16  block-banded stage-2 conv weights
    g*/be*  : (1, Cout)            f32   BatchNorm affine
    out_ref : (N*H, W*Cout)        f32   lane-dense output (reshaped to NHWC outside)
    pad1_ref: (N, H+2, W*Cin)      bf16  scratch, H-halo only (W pad folded into b1)
    pad2_ref: (N, H+2, W*Cout)     bf16  scratch, H-halo only
    """
    N = x_ref.shape[0]
    NH = N * H
    WCin = x_ref.shape[-1]
    WCout = W * Cout
    inv_count = 1.0 / float(N * H * W)

    def conv3x3_rows(pad_ref, b_ref, k_lanes):
        # Three kh-slab MXU matmuls accumulated in f32; no im2col materialization.
        acc = None
        for kh in range(3):
            slab = pad_ref[:, kh:kh + H, :].reshape(NH, k_lanes)     # bf16, minor dim kept
            part = jnp.dot(slab, b_ref[kh], preferred_element_type=jnp.float32)
            acc = part if acc is None else acc + part
        return acc                                                    # (NH, W*Cout) f32

    # ---- stage 1: halo-pad -> conv -> BN -> ReLU (intermediate never leaves VMEM) --------
    zrow1 = jnp.zeros((N, 1, WCin), pad1_ref.dtype)
    pad1_ref[:, 0:1, :] = zrow1                     # zero only the 1-row H halo ...
    pad1_ref[:, H + 1:H + 2, :] = zrow1
    pad1_ref[:, 1:H + 1, :] = x_ref[...]            # ... and write the interior exactly once
    y1 = conv3x3_rows(pad1_ref, b1_ref, WCin)
    z1 = _bn_relu_dense(y1, g1_ref[...], be1_ref[...], W, Cout, inv_count)

    # ---- stage 2: halo-pad -> conv -> BN -> ReLU -> lane-dense unmasked store ------------
    zrow2 = jnp.zeros((N, 1, WCout), pad2_ref.dtype)
    pad2_ref[:, 0:1, :] = zrow2
    pad2_ref[:, H + 1:H + 2, :] = zrow2
    pad2_ref[:, 1:H + 1, :] = z1.reshape(N, H, WCout).astype(pad2_ref.dtype)
    y2 = conv3x3_rows(pad2_ref, b2_ref, WCout)
    out_ref[...] = _bn_relu_dense(y2, g2_ref[...], be2_ref[...], W, Cout, inv_count)


# -----------------------------------------------------------------------------------------
# Wrappers
# -----------------------------------------------------------------------------------------
def double_conv_nhwc(x_nhwc, params):
    """NHWC forward of DoubleConv; a single fused pallas_call."""
    N, H, W, Cin = x_nhwc.shape
    Cout = params["w1"].shape[-1]

    # One-time weight layout transform (do at parameter-setup time in a real model).
    band1 = _band_conv_weights(params["w1"], W)               # (3, W*Cin,  W*Cout) bf16
    band2 = _band_conv_weights(params["w2"], W)               # (3, W*Cout, W*Cout) bf16
    g1 = params["g1"].reshape(1, Cout).astype(jnp.float32)
    be1 = params["be1"].reshape(1, Cout).astype(jnp.float32)
    g2 = params["g2"].reshape(1, Cout).astype(jnp.float32)
    be2 = params["be2"].reshape(1, Cout).astype(jnp.float32)
    # NOTE: conv biases are intentionally NOT passed -- training-mode BN subtracts the batch
    # mean, so a per-channel constant bias cancels exactly.

    # Lane-dense bf16 input rows: row-major reshape is free, the bf16 cast halves the input DMA.
    x_rows = x_nhwc.reshape(N, H, W * Cin).astype(jnp.bfloat16)

    buffers = [
        ((N, H, W * Cin), jnp.bfloat16),                      # x
        ((3, W * Cin, W * Cout), jnp.bfloat16),               # band1
        ((3, W * Cout, W * Cout), jnp.bfloat16),              # band2
        ((1, Cout), jnp.float32), ((1, Cout), jnp.float32),   # g1, be1
        ((1, Cout), jnp.float32), ((1, Cout), jnp.float32),   # g2, be2
        ((N * H, W * Cout), jnp.float32),                     # out
        ((N, H + 2, W * Cin), jnp.bfloat16),                  # pad1 scratch
        ((N, H + 2, W * Cout), jnp.bfloat16),                 # pad2 scratch
    ]
    vmem_bytes = sum(_tile_padded_bytes(s, d) for s, d in buffers)
    vmem_limit = int(2 * vmem_bytes) + (8 << 20)              # headroom for temporaries/spills

    vmem = pl.BlockSpec(memory_space=pltpu.MemorySpace.VMEM)
    kernel = functools.partial(_double_conv_kernel, H=H, W=W, Cout=Cout)
    out2d = pl.pallas_call(
        kernel,
        out_shape=jax.ShapeDtypeStruct((N * H, W * Cout), jnp.float32),
        in_specs=[vmem] * 7,
        out_specs=vmem,
        scratch_shapes=[
            pltpu.VMEM((N, H + 2, W * Cin), jnp.bfloat16),
            pltpu.VMEM((N, H + 2, W * Cout), jnp.bfloat16),
        ],
        compiler_params=pltpu.CompilerParams(vmem_limit_bytes=vmem_limit),
    )(x_rows, band1, band2, g1, be1, g2, be2)

    return out2d.reshape(N, H, W, Cout)   # free: same row-major layout


def double_conv(x_nchw, params):
    """NCHW-compatible wrapper (PyTorch convention).

    NOTE: the transposes are outside the hot path; keep the surrounding model NHWC end-to-end
    and call double_conv_nhwc directly for best performance.
    """
    x = jnp.transpose(x_nchw, (0, 2, 3, 1))      # NCHW -> NHWC
    y = double_conv_nhwc(x, params)
    return jnp.transpose(y, (0, 3, 1, 2))        # NHWC -> NCHW


def init_double_conv_params(key, in_channels, out_channels):
    """Deterministic synthetic parameters matching DoubleConv(in_channels, out_channels)."""
    k1, k2, k3, k4 = jax.random.split(key, 4)
    return {
        # conv weights in HWIO layout
        "w1": 0.1 * jax.random.normal(k1, (3, 3, in_channels, out_channels), jnp.float32),
        "b1": 0.1 * jax.random.normal(k2, (out_channels,), jnp.float32),  # cancels under BN
        "w2": 0.1 * jax.random.normal(k3, (3, 3, out_channels, out_channels), jnp.float32),
        "b2": 0.1 * jax.random.normal(k4, (out_channels,), jnp.float32),  # cancels under BN
        # BatchNorm affine params at PyTorch defaults
        "g1": jnp.ones((out_channels,), jnp.float32),
        "be1": jnp.zeros((out_channels,), jnp.float32),
        "g2": jnp.ones((out_channels,), jnp.float32),
        "be2": jnp.zeros((out_channels,), jnp.float32),
    }


def _reference_double_conv(x_nchw, params, eps=_BN_EPS):
    """Pure-XLA f32 reference (full module semantics incl. conv bias), evaluated on the same
    bf16-rounded inputs/weights/intermediate that the kernel consumes."""
    rd = lambda a: a.astype(jnp.bfloat16).astype(jnp.float32)

    def stage(t, w_hwio, bias, g, be):
        y = jax.lax.conv_general_dilated(
            t, rd(w_hwio), (1, 1), ((1, 1), (1, 1)),
            dimension_numbers=("NHWC", "HWIO", "NHWC"),
            precision=jax.lax.Precision.HIGHEST) + bias
        mean = jnp.mean(y, axis=(0, 1, 2))
        var = jnp.mean((y - mean) ** 2, axis=(0, 1, 2))
        y = (y - mean) * jax.lax.rsqrt(var + eps) * g + be
        return jnp.maximum(y, 0.0)

    x = rd(jnp.transpose(x_nchw, (0, 2, 3, 1)))               # NCHW -> NHWC, bf16-rounded
    h1 = rd(stage(x, params["w1"], params["b1"], params["g1"], params["be1"]))
    h2 = stage(h1, params["w2"], params["b2"], params["g2"], params["be2"])
    return jnp.transpose(h2, (0, 3, 1, 2))                    # NHWC -> NCHW


if __name__ == "__main__":
    key = jax.random.PRNGKey(0)
    k_x, k_p = jax.random.split(key)

    N, C_in, C_out, H, W = 2, 4, 8, 16, 16
    x = jax.random.normal(k_x, (N, C_in, H, W), jnp.float32)  # NCHW, like PyTorch
    params = init_double_conv_params(k_p, C_in, C_out)

    out = double_conv(x, params)
    jax.block_until_ready(out)

    assert out.shape == (N, C_out, H, W), out.shape
    assert out.dtype == jnp.float32
    assert bool(jnp.all(out >= 0.0))                          # ReLU output

    # Validate against the pure-XLA reference (bf16 operand rounding is the only difference).
    ref = _reference_double_conv(x, params)
    max_err = float(jnp.max(jnp.abs(out - ref)))
    assert max_err < 5e-2, f"max abs err {max_err}"

    print("KERNEL_OK")
</pallas_src>

<mosaic_0001>
module attributes {stable_mosaic.version = 11 : i64} {
  func.func @_double_conv_kernel(%arg0: memref<2x16x64xbf16, #tpu.memory_space<vmem>>, %arg1: memref<3x64x128xbf16, #tpu.memory_space<vmem>>, %arg2: memref<3x128x128xbf16, #tpu.memory_space<vmem>>, %arg3: memref<1x8xf32, #tpu.memory_space<vmem>>, %arg4: memref<1x8xf32, #tpu.memory_space<vmem>>, %arg5: memref<1x8xf32, #tpu.memory_space<vmem>>, %arg6: memref<1x8xf32, #tpu.memory_space<vmem>>, %arg7: memref<32x128xf32, #tpu.memory_space<vmem>>, %arg8: memref<2x18x64xbf16, #tpu.memory_space<vmem>>, %arg9: memref<2x18x128xbf16, #tpu.memory_space<vmem>>) attributes {dimension_semantics = [], scalar_prefetch = 0 : i64, scratch_operands = 2 : i64, tpu.core_type = #tpu.core_type<tc>} {
    %cst = arith.constant 0.000000e+00 : bf16
    %0 = vector.broadcast %cst : bf16 to vector<2x1x64xbf16>
    %c0 = arith.constant 0 : index
    %c0_0 = arith.constant 0 : index
    %c0_1 = arith.constant 0 : index
    %1 = vector.load %arg8[%c0, %c0_0, %c0_1] : memref<2x18x64xbf16, #tpu.memory_space<vmem>>, vector<2x1x64xbf16>
    tpu.vector_store %arg8[%c0, %c0_0, %c0_1], %0 {strides = array<i32>} : memref<2x18x64xbf16, #tpu.memory_space<vmem>>, vector<2x1x64xbf16>,
    %c0_2 = arith.constant 0 : index
    %c17 = arith.constant 17 : index
    %c0_3 = arith.constant 0 : index
    %2 = vector.load %arg8[%c0_2, %c17, %c0_3] : memref<2x18x64xbf16, #tpu.memory_space<vmem>>, vector<2x1x64xbf16>
    tpu.vector_store %arg8[%c0_2, %c17, %c0_3], %0 {strides = array<i32>} : memref<2x18x64xbf16, #tpu.memory_space<vmem>>, vector<2x1x64xbf16>,
    %c0_4 = arith.constant 0 : index
    %c0_5 = arith.constant 0 : index
    %c0_6 = arith.constant 0 : index
    %3 = vector.load %arg0[%c0_4, %c0_5, %c0_6] : memref<2x16x64xbf16, #tpu.memory_space<vmem>>, vector<2x16x64xbf16>
    %c0_7 = arith.constant 0 : index
    %c1 = arith.constant 1 : index
    %c0_8 = arith.constant 0 : index
    %4 = vector.load %arg8[%c0_7, %c1, %c0_8] : memref<2x18x64xbf16, #tpu.memory_space<vmem>>, vector<2x16x64xbf16>
    tpu.vector_store %arg8[%c0_7, %c1, %c0_8], %3 {strides = array<i32>} : memref<2x18x64xbf16, #tpu.memory_space<vmem>>, vector<2x16x64xbf16>,
    %c0_9 = arith.constant 0 : index
    %c0_10 = arith.constant 0 : index
    %c0_11 = arith.constant 0 : index
    %5 = vector.load %arg8[%c0_9, %c0_10, %c0_11] : memref<2x18x64xbf16, #tpu.memory_space<vmem>>, vector<2x16x64xbf16>
    %6 = vector.shape_cast %5 : vector<2x16x64xbf16> to vector<32x64xbf16>
    %c0_12 = arith.constant 0 : index
    %c0_13 = arith.constant 0 : index
    %c0_14 = arith.constant 0 : index
    %7 = vector.load %arg1[%c0_12, %c0_13, %c0_14] : memref<3x64x128xbf16, #tpu.memory_space<vmem>>, vector<1x64x128xbf16>
    %8 = vector.shape_cast %7 : vector<1x64x128xbf16> to vector<64x128xbf16>
    %cst_15 = arith.constant dense<0.000000e+00> : vector<32x128xf32>
    %9 = tpu.matmul %6, %8, %cst_15 {dimension_numbers = #tpu.dot_dimension_numbers<[1], [0], [0], [1], [0, 0, 1, 1], [], []>} : vector<32x64xbf16>, vector<64x128xbf16>, vector<32x128xf32> -> vector<32x128xf32>
    %c0_16 = arith.constant 0 : index
    %c1_17 = arith.constant 1 : index
    %c0_18 = arith.constant 0 : index
    %10 = vector.load %arg8[%c0_16, %c1_17, %c0_18] : memref<2x18x64xbf16, #tpu.memory_space<vmem>>, vector<2x16x64xbf16>
    %11 = vector.shape_cast %10 : vector<2x16x64xbf16> to vector<32x64xbf16>
    %c1_19 = arith.constant 1 : index
    %c0_20 = arith.constant 0 : index
    %c0_21 = arith.constant 0 : index
    %12 = vector.load %arg1[%c1_19, %c0_20, %c0_21] : memref<3x64x128xbf16, #tpu.memory_space<vmem>>, vector<1x64x128xbf16>
    %13 = vector.shape_cast %12 : vector<1x64x128xbf16> to vector<64x128xbf16>
    %cst_22 = arith.constant dense<0.000000e+00> : vector<32x128xf32>
    %14 = tpu.matmul %11, %13, %cst_22 {dimension_numbers = #tpu.dot_dimension_numbers<[1], [0], [0], [1], [0, 0, 1, 1], [], []>} : vector<32x64xbf16>, vector<64x128xbf16>, vector<32x128xf32> -> vector<32x128xf32>
    %15 = arith.addf %9, %14 : vector<32x128xf32>
    %c0_23 = arith.constant 0 : index
    %c2 = arith.constant 2 : index
    %c0_24 = arith.constant 0 : index
    %16 = vector.load %arg8[%c0_23, %c2, %c0_24] : memref<2x18x64xbf16, #tpu.memory_space<vmem>>, vector<2x16x64xbf16>
    %17 = vector.shape_cast %16 : vector<2x16x64xbf16> to vector<32x64xbf16>
    %c2_25 = arith.constant 2 : index
    %c0_26 = arith.constant 0 : index
    %c0_27 = arith.constant 0 : index
    %18 = vector.load %arg1[%c2_25, %c0_26, %c0_27] : memref<3x64x128xbf16, #tpu.memory_space<vmem>>, vector<1x64x128xbf16>
    %19 = vector.shape_cast %18 : vector<1x64x128xbf16> to vector<64x128xbf16>
    %cst_28 = arith.constant dense<0.000000e+00> : vector<32x128xf32>
    %20 = tpu.matmul %17, %19, %cst_28 {dimension_numbers = #tpu.dot_dimension_numbers<[1], [0], [0], [1], [0, 0, 1, 1], [], []>} : vector<32x64xbf16>, vector<64x128xbf16>, vector<32x128xf32> -> vector<32x128xf32>
    %21 = arith.addf %15, %20 : vector<32x128xf32>
    %c0_29 = arith.constant 0 : index
    %c0_30 = arith.constant 0 : index
    %22 = vector.load %arg3[%c0_29, %c0_30] : memref<1x8xf32, #tpu.memory_space<vmem>>, vector<1x8xf32>
    %c0_31 = arith.constant 0 : index
    %c0_32 = arith.constant 0 : index
    %23 = vector.load %arg4[%c0_31, %c0_32] : memref<1x8xf32, #tpu.memory_space<vmem>>, vector<1x8xf32>
    %cst_33 = arith.constant dense<0.000000e+00> : vector<128xf32>
    %24 = vector.multi_reduction <add>, %21, %cst_33 [0] : vector<32x128xf32> to vector<128xf32>
    %25 = vector.shape_cast %24 : vector<128xf32> to vector<1x128xf32>
    %26 = arith.mulf %21, %21 : vector<32x128xf32>
    %cst_34 = arith.constant dense<0.000000e+00> : vector<128xf32>
    %27 = vector.multi_reduction <add>, %26, %cst_34 [0] : vector<32x128xf32> to vector<128xf32>
    %28 = vector.shape_cast %27 : vector<128xf32> to vector<1x128xf32>
    %29 = vector.extract_strided_slice %25 {offsets = [0, 0], sizes = [1, 8], strides = [1, 1]} : vector<1x128xf32> to vector<1x8xf32>
    %30 = vector.extract_strided_slice %25 {offsets = [0, 8], sizes = [1, 8], strides = [1, 1]} : vector<1x128xf32> to vector<1x8xf32>
    %31 = arith.addf %29, %30 : vector<1x8xf32>
    %32 = vector.extract_strided_slice %25 {offsets = [0, 16], sizes = [1, 8], strides = [1, 1]} : vector<1x128xf32> to vector<1x8xf32>
    %33 = arith.addf %31, %32 : vector<1x8xf32>
    %34 = vector.extract_strided_slice %25 {offsets = [0, 24], sizes = [1, 8], strides = [1, 1]} : vector<1x128xf32> to vector<1x8xf32>
    %35 = arith.addf %33, %34 : vector<1x8xf32>
    %36 = vector.extract_strided_slice %25 {offsets = [0, 32], sizes = [1, 8], strides = [1, 1]} : vector<1x128xf32> to vector<1x8xf32>
    %37 = arith.addf %35, %36 : vector<1x8xf32>
    %38 = vector.extract_strided_slice %25 {offsets = [0, 40], sizes = [1, 8], strides = [1, 1]} : vector<1x128xf32> to vector<1x8xf32>
    %39 = arith.addf %37, %38 : vector<1x8xf32>
    %40 = vector.extract_strided_slice %25 {offsets = [0, 48], sizes = [1, 8], strides = [1, 1]} : vector<1x128xf32> to vector<1x8xf32>
    %41 = arith.addf %39, %40 : vector<1x8xf32>
    %42 = vector.extract_strided_slice %25 {offsets = [0, 56], sizes = [1, 8], strides = [1, 1]} : vector<1x128xf32> to vector<1x8xf32>
    %43 = arith.addf %41, %42 : vector<1x8xf32>
    %44 = vector.extract_strided_slice %25 {offsets = [0, 64], sizes = [1, 8], strides = [1, 1]} : vector<1x128xf32> to vector<1x8xf32>
    %45 = arith.addf %43, %44 : vector<1x8xf32>
    %46 = vector.extract_strided_slice %25 {offsets = [0, 72], sizes = [1, 8], strides = [1, 1]} : vector<1x128xf32> to vector<1x8xf32>
    %47 = arith.addf %45, %46 : vector<1x8xf32>
    %48 = vector.extract_strided_slice %25 {offsets = [0, 80], sizes = [1, 8], strides = [1, 1]} : vector<1x128xf32> to vector<1x8xf32>
    %49 = arith.addf %47, %48 : vector<1x8xf32>
    %50 = vector.extract_strided_slice %25 {offsets = [0, 88], sizes = [1, 8], strides = [1, 1]} : vector<1x128xf32> to vector<1x8xf32>
    %51 = arith.addf %49, %50 : vector<1x8xf32>
    %52 = vector.extract_strided_slice %25 {offsets = [0, 96], sizes = [1, 8], strides = [1, 1]} : vector<1x128xf32> to vector<1x8xf32>
    %53 = arith.addf %51, %52 : vector<1x8xf32>
    %54 = vector.extract_strided_slice %25 {offsets = [0, 104], sizes = [1, 8], strides = [1, 1]} : vector<1x128xf32> to vector<1x8xf32>
    %55 = arith.addf %53, %54 : vector<1x8xf32>
    %56 = vector.extract_strided_slice %25 {offsets = [0, 112], sizes = [1, 8], strides = [1, 1]} : vector<1x128xf32> to vector<1x8xf32>
    %57 = arith.addf %55, %56 : vector<1x8xf32>
    %58 = vector.extract_strided_slice %25 {offsets = [0, 120], sizes = [1, 8], strides = [1, 1]} : vector<1x128xf32> to vector<1x8xf32>
    %59 = arith.addf %57, %58 : vector<1x8xf32>
    %cst_35 = arith.constant 0.001953125 : f32
    %60 = vector.broadcast %cst_35 : f32 to vector<1x8xf32>
    %61 = arith.mulf %59, %60 : vector<1x8xf32>
    %62 = vector.extract_strided_slice %28 {offsets = [0, 0], sizes = [1, 8], strides = [1, 1]} : vector<1x128xf32> to vector<1x8xf32>
    %63 = vector.extract_strided_slice %28 {offsets = [0, 8], sizes = [1, 8], strides = [1, 1]} : vector<1x128xf32> to vector<1x8xf32>
    %64 = arith.addf %62, %63 : vector<1x8xf32>
    %65 = vector.extract_strided_slice %28 {offsets = [0, 16], sizes = [1, 8], strides = [1, 1]} : vector<1x128xf32> to vector<1x8xf32>
    %66 = arith.addf %64, %65 : vector<1x8xf32>
    %67 = vector.extract_strided_slice %28 {offsets = [0, 24], sizes = [1, 8], strides = [1, 1]} : vector<1x128xf32> to vector<1x8xf32>
    %68 = arith.addf %66, %67 : vector<1x8xf32>
    %69 = vector.extract_strided_slice %28 {offsets = [0, 32], sizes = [1, 8], strides = [1, 1]} : vector<1x128xf32> to vector<1x8xf32>
    %70 = arith.addf %68, %69 : vector<1x8xf32>
    %71 = vector.extract_strided_slice %28 {offsets = [0, 40], sizes = [1, 8], strides = [1, 1]} : vector<1x128xf32> to vector<1x8xf32>
    %72 = arith.addf %70, %71 : vector<1x8xf32>
    %73 = vector.extract_strided_slice %28 {offsets = [0, 48], sizes = [1, 8], strides = [1, 1]} : vector<1x128xf32> to vector<1x8xf32>
    %74 = arith.addf %72, %73 : vector<1x8xf32>
    %75 = vector.extract_strided_slice %28 {offsets = [0, 56], sizes = [1, 8], strides = [1, 1]} : vector<1x128xf32> to vector<1x8xf32>
    %76 = arith.addf %74, %75 : vector<1x8xf32>
    %77 = vector.extract_strided_slice %28 {offsets = [0, 64], sizes = [1, 8], strides = [1, 1]} : vector<1x128xf32> to vector<1x8xf32>
    %78 = arith.addf %76, %77 : vector<1x8xf32>
    %79 = vector.extract_strided_slice %28 {offsets = [0, 72], sizes = [1, 8], strides = [1, 1]} : vector<1x128xf32> to vector<1x8xf32>
    %80 = arith.addf %78, %79 : vector<1x8xf32>
    %81 = vector.extract_strided_slice %28 {offsets = [0, 80], sizes = [1, 8], strides = [1, 1]} : vector<1x128xf32> to vector<1x8xf32>
    %82 = arith.addf %80, %81 : vector<1x8xf32>
    %83 = vector.extract_strided_slice %28 {offsets = [0, 88], sizes = [1, 8], strides = [1, 1]} : vector<1x128xf32> to vector<1x8xf32>
    %84 = arith.addf %82, %83 : vector<1x8xf32>
    %85 = vector.extract_strided_slice %28 {offsets = [0, 96], sizes = [1, 8], strides = [1, 1]} : vector<1x128xf32> to vector<1x8xf32>
    %86 = arith.addf %84, %85 : vector<1x8xf32>
    %87 = vector.extract_strided_slice %28 {offsets = [0, 104], sizes = [1, 8], strides = [1, 1]} : vector<1x128xf32> to vector<1x8xf32>
    %88 = arith.addf %86, %87 : vector<1x8xf32>
    %89 = vector.extract_strided_slice %28 {offsets = [0, 112], sizes = [1, 8], strides = [1, 1]} : vector<1x128xf32> to vector<1x8xf32>
    %90 = arith.addf %88, %89 : vector<1x8xf32>
    %91 = vector.extract_strided_slice %28 {offsets = [0, 120], sizes = [1, 8], strides = [1, 1]} : vector<1x128xf32> to vector<1x8xf32>
    %92 = arith.addf %90, %91 : vector<1x8xf32>
    %cst_36 = arith.constant 0.001953125 : f32
    %93 = vector.broadcast %cst_36 : f32 to vector<1x8xf32>
    %94 = arith.mulf %92, %93 : vector<1x8xf32>
    %95 = arith.mulf %61, %61 : vector<1x8xf32>
    %96 = arith.subf %94, %95 : vector<1x8xf32>
    %cst_37 = arith.constant 0.000000e+00 : f32
    %97 = vector.broadcast %cst_37 : f32 to vector<1x8xf32>
    %98 = arith.maximumf %96, %97 : vector<1x8xf32>
    %cst_38 = arith.constant 9.99999974E-6 : f32
    %99 = vector.broadcast %cst_38 : f32 to vector<1x8xf32>
    %100 = arith.addf %98, %99 : vector<1x8xf32>
    %101 = math.rsqrt %100 : vector<1x8xf32>
    %102 = arith.mulf %22, %101 : vector<1x8xf32>
    %103 = arith.mulf %61, %102 : vector<1x8xf32>
    %104 = arith.subf %23, %103 : vector<1x8xf32>
    %105 = tpu.concatenate %102, %102, %102, %102, %102, %102, %102, %102, %102, %102, %102, %102, %102, %102, %102, %102 in 1 : vector<1x8xf32>, vector<1x8xf32>, vector<1x8xf32>, vector<1x8xf32>, vector<1x8xf32>, vector<1x8xf32>, vector<1x8xf32>, vector<1x8xf32>, vector<1x8xf32>, vector<1x8xf32>, vector<1x8xf32>, vector<1x8xf32>, vector<1x8xf32>, vector<1x8xf32>, vector<1x8xf32>, vector<1x8xf32> -> vector<1x128xf32>
    %106 = vector.broadcast %105 : vector<1x128xf32> to vector<32x128xf32>
    %107 = arith.mulf %21, %106 : vector<32x128xf32>
    %108 = tpu.concatenate %104, %104, %104, %104, %104, %104, %104, %104, %104, %104, %104, %104, %104, %104, %104, %104 in 1 : vector<1x8xf32>, vector<1x8xf32>, vector<1x8xf32>, vector<1x8xf32>, vector<1x8xf32>, vector<1x8xf32>, vector<1x8xf32>, vector<1x8xf32>, vector<1x8xf32>, vector<1x8xf32>, vector<1x8xf32>, vector<1x8xf32>, vector<1x8xf32>, vector<1x8xf32>, vector<1x8xf32>, vector<1x8xf32> -> vector<1x128xf32>
    %109 = vector.broadcast %108 : vector<1x128xf32> to vector<32x128xf32>
    %110 = arith.addf %107, %109 : vector<32x128xf32>
    %cst_39 = arith.constant 0.000000e+00 : f32
    %111 = vector.broadcast %cst_39 : f32 to vector<32x128xf32>
    %112 = arith.maximumf %110, %111 : vector<32x128xf32>
    %cst_40 = arith.constant 0.000000e+00 : bf16
    %113 = vector.broadcast %cst_40 : bf16 to vector<2x1x128xbf16>
    %c0_41 = arith.constant 0 : index
    %c0_42 = arith.constant 0 : index
    %c0_43 = arith.constant 0 : index
    %114 = vector.load %arg9[%c0_41, %c0_42, %c0_43] : memref<2x18x128xbf16, #tpu.memory_space<vmem>>, vector<2x1x128xbf16>
    tpu.vector_store %arg9[%c0_41, %c0_42, %c0_43], %113 {strides = array<i32>} : memref<2x18x128xbf16, #tpu.memory_space<vmem>>, vector<2x1x128xbf16>,
    %c0_44 = arith.constant 0 : index
    %c17_45 = arith.constant 17 : index
    %c0_46 = arith.constant 0 : index
    %115 = vector.load %arg9[%c0_44, %c17_45, %c0_46] : memref<2x18x128xbf16, #tpu.memory_space<vmem>>, vector<2x1x128xbf16>
    tpu.vector_store %arg9[%c0_44, %c17_45, %c0_46], %113 {strides = array<i32>} : memref<2x18x128xbf16, #tpu.memory_space<vmem>>, vector<2x1x128xbf16>,
    %116 = vector.shape_cast %112 : vector<32x128xf32> to vector<2x16x128xf32>
    %117 = arith.truncf %116 : vector<2x16x128xf32> to vector<2x16x128xbf16>
    %c0_47 = arith.constant 0 : index
    %c1_48 = arith.constant 1 : index
    %c0_49 = arith.constant 0 : index
    %118 = vector.load %arg9[%c0_47, %c1_48, %c0_49] : memref<2x18x128xbf16, #tpu.memory_space<vmem>>, vector<2x16x128xbf16>
    tpu.vector_store %arg9[%c0_47, %c1_48, %c0_49], %117 {strides = array<i32>} : memref<2x18x128xbf16, #tpu.memory_space<vmem>>, vector<2x16x128xbf16>,
    %c0_50 = arith.constant 0 : index
    %c0_51 = arith.constant 0 : index
    %c0_52 = arith.constant 0 : index
    %119 = vector.load %arg9[%c0_50, %c0_51, %c0_52] : memref<2x18x128xbf16, #tpu.memory_space<vmem>>, vector<2x16x128xbf16>
    %120 = vector.shape_cast %119 : vector<2x16x128xbf16> to vector<32x128xbf16>
    %c0_53 = arith.constant 0 : index
    %c0_54 = arith.constant 0 : index
    %c0_55 = arith.constant 0 : index
    %121 = vector.load %arg2[%c0_53, %c0_54, %c0_55] : memref<3x128x128xbf16, #tpu.memory_space<vmem>>, vector<1x128x128xbf16>
    %122 = vector.shape_cast %121 : vector<1x128x128xbf16> to vector<128x128xbf16>
    %cst_56 = arith.constant dense<0.000000e+00> : vector<32x128xf32>
    %123 = tpu.matmul %120, %122, %cst_56 {dimension_numbers = #tpu.dot_dimension_numbers<[1], [0], [0], [1], [0, 0, 1, 1], [], []>} : vector<32x128xbf16>, vector<128x128xbf16>, vector<32x128xf32> -> vector<32x128xf32>
    %c0_57 = arith.constant 0 : index
    %c1_58 = arith.constant 1 : index
    %c0_59 = arith.constant 0 : index
    %124 = vector.load %arg9[%c0_57, %c1_58, %c0_59] : memref<2x18x128xbf16, #tpu.memory_space<vmem>>, vector<2x16x128xbf16>
    %125 = vector.shape_cast %124 : vector<2x16x128xbf16> to vector<32x128xbf16>
    %c1_60 = arith.constant 1 : index
    %c0_61 = arith.constant 0 : index
    %c0_62 = arith.constant 0 : index
    %126 = vector.load %arg2[%c1_60, %c0_61, %c0_62] : memref<3x128x128xbf16, #tpu.memory_space<vmem>>, vector<1x128x128xbf16>
    %127 = vector.shape_cast %126 : vector<1x128x128xbf16> to vector<128x128xbf16>
    %cst_63 = arith.constant dense<0.000000e+00> : vector<32x128xf32>
    %128 = tpu.matmul %125, %127, %cst_63 {dimension_numbers = #tpu.dot_dimension_numbers<[1], [0], [0], [1], [0, 0, 1, 1], [], []>} : vector<32x128xbf16>, vector<128x128xbf16>, vector<32x128xf32> -> vector<32x128xf32>
    %129 = arith.addf %123, %128 : vector<32x128xf32>
    %c0_64 = arith.constant 0 : index
    %c2_65 = arith.constant 2 : index
    %c0_66 = arith.constant 0 : index
    %130 = vector.load %arg9[%c0_64, %c2_65, %c0_66] : memref<2x18x128xbf16, #tpu.memory_space<vmem>>, vector<2x16x128xbf16>
    %131 = vector.shape_cast %130 : vector<2x16x128xbf16> to vector<32x128xbf16>
    %c2_67 = arith.constant 2 : index
    %c0_68 = arith.constant 0 : index
    %c0_69 = arith.constant 0 : index
    %132 = vector.load %arg2[%c2_67, %c0_68, %c0_69] : memref<3x128x128xbf16, #tpu.memory_space<vmem>>, vector<1x128x128xbf16>
    %133 = vector.shape_cast %132 : vector<1x128x128xbf16> to vector<128x128xbf16>
    %cst_70 = arith.constant dense<0.000000e+00> : vector<32x128xf32>
    %134 = tpu.matmul %131, %133, %cst_70 {dimension_numbers = #tpu.dot_dimension_numbers<[1], [0], [0], [1], [0, 0, 1, 1], [], []>} : vector<32x128xbf16>, vector<128x128xbf16>, vector<32x128xf32> -> vector<32x128xf32>
    %135 = arith.addf %129, %134 : vector<32x128xf32>
    %c0_71 = arith.constant 0 : index
    %c0_72 = arith.constant 0 : index
    %136 = vector.load %arg5[%c0_71, %c0_72] : memref<1x8xf32, #tpu.memory_space<vmem>>, vector<1x8xf32>
    %c0_73 = arith.constant 0 : index
    %c0_74 = arith.constant 0 : index
    %137 = vector.load %arg6[%c0_73, %c0_74] : memref<1x8xf32, #tpu.memory_space<vmem>>, vector<1x8xf32>
    %cst_75 = arith.constant dense<0.000000e+00> : vector<128xf32>
    %138 = vector.multi_reduction <add>, %135, %cst_75 [0] : vector<32x128xf32> to vector<128xf32>
    %139 = vector.shape_cast %138 : vector<128xf32> to vector<1x128xf32>
    %140 = arith.mulf %135, %135 : vector<32x128xf32>
    %cst_76 = arith.constant dense<0.000000e+00> : vector<128xf32>
    %141 = vector.multi_reduction <add>, %140, %cst_76 [0] : vector<32x128xf32> to vector<128xf32>
    %142 = vector.shape_cast %141 : vector<128xf32> to vector<1x128xf32>
    %143 = vector.extract_strided_slice %139 {offsets = [0, 0], sizes = [1, 8], strides = [1, 1]} : vector<1x128xf32> to vector<1x8xf32>
    %144 = vector.extract_strided_slice %139 {offsets = [0, 8], sizes = [1, 8], strides = [1, 1]} : vector<1x128xf32> to vector<1x8xf32>
    %145 = arith.addf %143, %144 : vector<1x8xf32>
    %146 = vector.extract_strided_slice %139 {offsets = [0, 16], sizes = [1, 8], strides = [1, 1]} : vector<1x128xf32> to vector<1x8xf32>
    %147 = arith.addf %145, %146 : vector<1x8xf32>
    %148 = vector.extract_strided_slice %139 {offsets = [0, 24], sizes = [1, 8], strides = [1, 1]} : vector<1x128xf32> to vector<1x8xf32>
    %149 = arith.addf %147, %148 : vector<1x8xf32>
    %150 = vector.extract_strided_slice %139 {offsets = [0, 32], sizes = [1, 8], strides = [1, 1]} : vector<1x128xf32> to vector<1x8xf32>
    %151 = arith.addf %149, %150 : vector<1x8xf32>
    %152 = vector.extract_strided_slice %139 {offsets = [0, 40], sizes = [1, 8], strides = [1, 1]} : vector<1x128xf32> to vector<1x8xf32>
    %153 = arith.addf %151, %152 : vector<1x8xf32>
    %154 = vector.extract_strided_slice %139 {offsets = [0, 48], sizes = [1, 8], strides = [1, 1]} : vector<1x128xf32> to vector<1x8xf32>
    %155 = arith.addf %153, %154 : vector<1x8xf32>
    %156 = vector.extract_strided_slice %139 {offsets = [0, 56], sizes = [1, 8], strides = [1, 1]} : vector<1x128xf32> to vector<1x8xf32>
    %157 = arith.addf %155, %156 : vector<1x8xf32>
    %158 = vector.extract_strided_slice %139 {offsets = [0, 64], sizes = [1, 8], strides = [1, 1]} : vector<1x128xf32> to vector<1x8xf32>
    %159 = arith.addf %157, %158 : vector<1x8xf32>
    %160 = vector.extract_strided_slice %139 {offsets = [0, 72], sizes = [1, 8], strides = [1, 1]} : vector<1x128xf32> to vector<1x8xf32>
    %161 = arith.addf %159, %160 : vector<1x8xf32>
    %162 = vector.extract_strided_slice %139 {offsets = [0, 80], sizes = [1, 8], strides = [1, 1]} : vector<1x128xf32> to vector<1x8xf32>
    %163 = arith.addf %161, %162 : vector<1x8xf32>
    %164 = vector.extract_strided_slice %139 {offsets = [0, 88], sizes = [1, 8], strides = [1, 1]} : vector<1x128xf32> to vector<1x8xf32>
    %165 = arith.addf %163, %164 : vector<1x8xf32>
    %166 = vector.extract_strided_slice %139 {offsets = [0, 96], sizes = [1, 8], strides = [1, 1]} : vector<1x128xf32> to vector<1x8xf32>
    %167 = arith.addf %165, %166 : vector<1x8xf32>
    %168 = vector.extract_strided_slice %139 {offsets = [0, 104], sizes = [1, 8], strides = [1, 1]} : vector<1x128xf32> to vector<1x8xf32>
    %169 = arith.addf %167, %168 : vector<1x8xf32>
    %170 = vector.extract_strided_slice %139 {offsets = [0, 112], sizes = [1, 8], strides = [1, 1]} : vector<1x128xf32> to vector<1x8xf32>
    %171 = arith.addf %169, %170 : vector<1x8xf32>
    %172 = vector.extract_strided_slice %139 {offsets = [0, 120], sizes = [1, 8], strides = [1, 1]} : vector<1x128xf32> to vector<1x8xf32>
    %173 = arith.addf %171, %172 : vector<1x8xf32>
    %cst_77 = arith.constant 0.001953125 : f32
    %174 = vector.broadcast %cst_77 : f32 to vector<1x8xf32>
    %175 = arith.mulf %173, %174 : vector<1x8xf32>
    %176 = vector.extract_strided_slice %142 {offsets = [0, 0], sizes = [1, 8], strides = [1, 1]} : vector<1x128xf32> to vector<1x8xf32>
    %177 = vector.extract_strided_slice %142 {offsets = [0, 8], sizes = [1, 8], strides = [1, 1]} : vector<1x128xf32> to vector<1x8xf32>
    %178 = arith.addf %176, %177 : vector<1x8xf32>
    %179 = vector.extract_strided_slice %142 {offsets = [0, 16], sizes = [1, 8], strides = [1, 1]} : vector<1x128xf32> to vector<1x8xf32>
    %180 = arith.addf %178, %179 : vector<1x8xf32>
    %181 = vector.extract_strided_slice %142 {offsets = [0, 24], sizes = [1, 8], strides = [1, 1]} : vector<1x128xf32> to vector<1x8xf32>
    %182 = arith.addf %180, %181 : vector<1x8xf32>
    %183 = vector.extract_strided_slice %142 {offsets = [0, 32], sizes = [1, 8], strides = [1, 1]} : vector<1x128xf32> to vector<1x8xf32>
    %184 = arith.addf %182, %183 : vector<1x8xf32>
    %185 = vector.extract_strided_slice %142 {offsets = [0, 40], sizes = [1, 8], strides = [1, 1]} : vector<1x128xf32> to vector<1x8xf32>
    %186 = arith.addf %184, %185 : vector<1x8xf32>
    %187 = vector.extract_strided_slice %142 {offsets = [0, 48], sizes = [1, 8], strides = [1, 1]} : vector<1x128xf32> to vector<1x8xf32>
    %188 = arith.addf %186, %187 : vector<1x8xf32>
    %189 = vector.extract_strided_slice %142 {offsets = [0, 56], sizes = [1, 8], strides = [1, 1]} : vector<1x128xf32> to vector<1x8xf32>
    %190 = arith.addf %188, %189 : vector<1x8xf32>
    %191 = vector.extract_strided_slice %142 {offsets = [0, 64], sizes = [1, 8], strides = [1, 1]} : vector<1x128xf32> to vector<1x8xf32>
    %192 = arith.addf %190, %191 : vector<1x8xf32>
    %193 = vector.extract_strided_slice %142 {offsets = [0, 72], sizes = [1, 8], strides = [1, 1]} : vector<1x128xf32> to vector<1x8xf32>
    %194 = arith.addf %192, %193 : vector<1x8xf32>
    %195 = vector.extract_strided_slice %142 {offsets = [0, 80], sizes = [1, 8], strides = [1, 1]} : vector<1x128xf32> to vector<1x8xf32>
    %196 = arith.addf %194, %195 : vector<1x8xf32>
    %197 = vector.extract_strided_slice %142 {offsets = [0, 88], sizes = [1, 8], strides = [1, 1]} : vector<1x128xf32> to vector<1x8xf32>
    %198 = arith.addf %196, %197 : vector<1x8xf32>
    %199 = vector.extract_strided_slice %142 {offsets = [0, 96], sizes = [1, 8], strides = [1, 1]} : vector<1x128xf32> to vector<1x8xf32>
    %200 = arith.addf %198, %199 : vector<1x8xf32>
    %201 = vector.extract_strided_slice %142 {offsets = [0, 104], sizes = [1, 8], strides = [1, 1]} : vector<1x128xf32> to vector<1x8xf32>
    %202 = arith.addf %200, %201 : vector<1x8xf32>
    %203 = vector.extract_strided_slice %142 {offsets = [0, 112], sizes = [1, 8], strides = [1, 1]} : vector<1x128xf32> to vector<1x8xf32>
    %204 = arith.addf %202, %203 : vector<1x8xf32>
    %205 = vector.extract_strided_slice %142 {offsets = [0, 120], sizes = [1, 8], strides = [1, 1]} : vector<1x128xf32> to vector<1x8xf32>
    %206 = arith.addf %204, %205 : vector<1x8xf32>
    %cst_78 = arith.constant 0.001953125 : f32
    %207 = vector.broadcast %cst_78 : f32 to vector<1x8xf32>
    %208 = arith.mulf %206, %207 : vector<1x8xf32>
    %209 = arith.mulf %175, %175 : vector<1x8xf32>
    %210 = arith.subf %208, %209 : vector<1x8xf32>
    %cst_79 = arith.constant 0.000000e+00 : f32
    %211 = vector.broadcast %cst_79 : f32 to vector<1x8xf32>
    %212 = arith.maximumf %210, %211 : vector<1x8xf32>
    %cst_80 = arith.constant 9.99999974E-6 : f32
    %213 = vector.broadcast %cst_80 : f32 to vector<1x8xf32>
    %214 = arith.addf %212, %213 : vector<1x8xf32>
    %215 = math.rsqrt %214 : vector<1x8xf32>
    %216 = arith.mulf %136, %215 : vector<1x8xf32>
    %217 = arith.mulf %175, %216 : vector<1x8xf32>
    %218 = arith.subf %137, %217 : vector<1x8xf32>
    %219 = tpu.concatenate %216, %216, %216, %216, %216, %216, %216, %216, %216, %216, %216, %216, %216, %216, %216, %216 in 1 : vector<1x8xf32>, vector<1x8xf32>, vector<1x8xf32>, vector<1x8xf32>, vector<1x8xf32>, vector<1x8xf32>, vector<1x8xf32>, vector<1x8xf32>, vector<1x8xf32>, vector<1x8xf32>, vector<1x8xf32>, vector<1x8xf32>, vector<1x8xf32>, vector<1x8xf32>, vector<1x8xf32>, vector<1x8xf32> -> vector<1x128xf32>
    %220 = vector.broadcast %219 : vector<1x128xf32> to vector<32x128xf32>
    %221 = arith.mulf %135, %220 : vector<32x128xf32>
    %222 = tpu.concatenate %218, %218, %218, %218, %218, %218, %218, %218, %218, %218, %218, %218, %218, %218, %218, %218 in 1 : vector<1x8xf32>, vector<1x8xf32>, vector<1x8xf32>, vector<1x8xf32>, vector<1x8xf32>, vector<1x8xf32>, vector<1x8xf32>, vector<1x8xf32>, vector<1x8xf32>, vector<1x8xf32>, vector<1x8xf32>, vector<1x8xf32>, vector<1x8xf32>, vector<1x8xf32>, vector<1x8xf32>, vector<1x8xf32> -> vector<1x128xf32>
    %223 = vector.broadcast %222 : vector<1x128xf32> to vector<32x128xf32>
    %224 = arith.addf %221, %223 : vector<32x128xf32>
    %cst_81 = arith.constant 0.000000e+00 : f32
    %225 = vector.broadcast %cst_81 : f32 to vector<32x128xf32>
    %226 = arith.maximumf %224, %225 : vector<32x128xf32>
    %c0_82 = arith.constant 0 : index
    %c0_83 = arith.constant 0 : index
    %227 = vector.load %arg7[%c0_82, %c0_83] : memref<32x128xf32, #tpu.memory_space<vmem>>, vector<32x128xf32>
    tpu.vector_store %arg7[%c0_82, %c0_83], %226 {strides = array<i32>} : memref<32x128xf32, #tpu.memory_space<vmem>>, vector<32x128xf32>,
    return
  }
}

</mosaic_0001>

<bundles_post_ra>
// kernel: tpu_custom_call.1
= control target key start
LH: loop header
LB: loop body
LE: loop exit
PB: predicated region body
PF: predicated region fallthrough
CT: control target
= control target key end

     0   :  { %12 = vsyncpa [#allocation5], 0  ;;  %s2540_s0 = inlined_call_operand.hbm [shape: bf16[2,16,64], index: 0, kind: input, shape index: {}]   ;;  %s2541_s1 = inlined_call_operand.hbm [shape: bf16[3,64,128], index: 1, kind: input, shape index: {}]   ;;  %s2542_s2 = inlined_call_operand.hbm [shape: bf16[3,128,128], index: 2, kind: input, shape index: {}]   ;;  %s2543_s3 = inlined_call_operand.vmem [shape: f32[1,8], index: 3, kind: input, shape index: {}]   ;;  %s2544_s4 = inlined_call_operand.vmem [shape: f32[1,8], index: 4, kind: input, shape index: {}]   ;;  %s2545_s5 = inlined_call_operand.vmem [shape: f32[1,8], index: 5, kind: input, shape index: {}]   ;;  %s2546_s6 = inlined_call_operand.vmem [shape: f32[1,8], index: 6, kind: input, shape index: {}]   ;;  %s2547_s7 = inlined_call_operand.hbm [shape: f32[32,128], index: 7, kind: output, shape index: {}]  }
   0x1   :  { %13 = vsyncpa [#allocation8], 0 }
   0x2   :  { %14 = vsyncpa [#allocation6], 0  ;;  %s2058_s24 = smov [#allocation7]   ;;  %s2059_s26 = smov [#allocation4]  }
   0x3   :  { %s32_s25 = sshll.u32 %s2058_s24, 4  ;;  %s20_s27 = sshll.u32 %s2059_s26, 4  ;;  %s33_s25 = int_to_ptr.vmem [resolvable:$true] %s32_s25  ;;  %s21_s27 = int_to_ptr.vmem [resolvable:$true] %s20_s27 }
   0x4   :  { %s1980_s28 = scalar_lea.vmem %s33_s25, 1536  ;;  %p1985_p1 = scmp.lt.s32.totalorder %s33_s25, %s33_s25 }
   0x5   :  { %p1981_p0 = scmp.ne.s32.totalorder %s33_s25, %s1980_s28  ;;  %p1986_p2 = scmp.lt.s32.totalorder %s1980_s28, %s1980_s28 }
   0x7   :  { %p1987_p3 = por %p1986_p2, %p1985_p1 }
   0x9   :  { %p1988_p4 = pnand %p1987_p3, %p1981_p0 }
   0xb   :  { %1991 = shalt.err (!%p1988_p4)
}
   0xc   :  { %s2060_s29 = smov 64   ;;  %s2061_s30 = smov 4  }
   0xd   :  { %38 = dma.hbm_to_vmem [thread:$0]  %s2541_s1, 1536, %s33_s25, [#allocation8], %s2060_s29, %s2060_s29, %s2061_s30  }
   0xe   :  { %s2000_s10 = scalar_lea.vmem %s21_s27, 256  ;;  %p2005_p6 = scmp.lt.s32.totalorder %s21_s27, %s21_s27 }
   0xf   :  { %p2001_p5 = scmp.ne.s32.totalorder %s21_s27, %s2000_s10  ;;  %p2006_p7 = scmp.lt.s32.totalorder %s2000_s10, %s2000_s10 }
  0x11   :  { %p2007_p8 = por %p2006_p7, %p2005_p6 }
  0x13   :  { %p2008_p9 = pnand %p2007_p8, %p2001_p5 }
  0x15   :  { %2011 = shalt.err (!%p2008_p9)
}
  0x16   :  { %26 = dma.hbm_to_vmem [thread:$0]  %s2540_s0, 256, %s21_s27, [#allocation5], %s2060_s29, %s2060_s29, %s2061_s30  }
  0x17   :  { %s2062_s13 = smov [#allocation9]  }
  0x18   :  { %s44_s14 = sshll.u32 %s2062_s13, 4  ;;  %s45_s14 = int_to_ptr.vmem [resolvable:$true] %s44_s14 }
  0x19   :  { %s2020_s15 = scalar_lea.vmem %s45_s14, 3072  ;;  %p2025_p11 = scmp.lt.s32.totalorder %s45_s14, %s45_s14 }
  0x1a   :  { %p2021_p10 = scmp.ne.s32.totalorder %s45_s14, %s2020_s15  ;;  %p2026_p12 = scmp.lt.s32.totalorder %s2020_s15, %s2020_s15 }
  0x1c   :  { %p2027_p13 = por %p2026_p12, %p2025_p11 }
  0x1e   :  { %p2028_p0 = pnand %p2027_p13, %p2021_p10 }
  0x20   :  { %2031 = shalt.err (!%p2028_p0)
}
  0x21   :  { %50 = dma.hbm_to_vmem [thread:$0]  %s2542_s2, 3072, %s45_s14, [#allocation8], %s2060_s29, %s2060_s29, %s2061_s30  }
  0x22   :  { %2052 = dma.done.wait [#allocation5], 256  }
  0x23   :  { %2053 = vsyncadd [#allocation5], 4294967040 }
  0x24   :  { %2054 = dma.done.wait [#allocation8], 4608  }
  0x25   :  { %2055 = vsyncadd [#allocation8], 4294962688  ;;  %vm69_vm0 = vcmask 516096   ;;  %vm70_vm1 = vsmask.f32 256  ;;  %v1928_v1 = vld [vmem:[#allocation7 + $0x38] sm:$0xff]  }
  0x26   :  { %vm2136_vm2 = vmand %vm69_vm0, %vm70_vm1  ;;  %vm2549_vm3 = vsmask.f32 7938  ;;  %v1929_v2 = vld [vmem:[#allocation7 + $0x18] sm:$0xff]   ;;  %1811 = vmatprep.subr.bf16.mxu0 %v1928_v1  ;;  %v1930_v3 = vld [vmem:[#allocation7 + $0x30] sm:$0xff]   ;;  %vm90_vm5 = vsmask.f32 4368 }
  0x27   :  { %1812 = vmatpush3.bf16.msra.mxu0 %v1928_v1  ;;  %1823 = vmatprep.subr.bf16.mxu1 %v1929_v2  ;;  %v1931_v4 = vld [vmem:[#allocation7 + $0x10] sm:$0xff]   ;;  %v1932_v5 = vld [vmem:[#allocation7 + $0x28] sm:$0xff]   ;;  %vm2142_vm4 = vmand %vm69_vm0, %vm2549_vm3  ;;  %vm132_vm6 = vcmask 519168   ;;  %vm253_vm9 = vcmask 523264   ;;  %vm163_vm10 = vsmask.f32 3328 }
  0x28   :  { %1824 = vmatpush3.bf16.msra.mxu1 %v1929_v2  ;;  %1813 = vmatprep.subr.bf16.mxu0 %v1930_v3  ;;  %v1933_v6 = vld [vmem:[#allocation7 + $0x8] sm:$0xff]   ;;  %v1934_v8 = vld [vmem:[#allocation7 + $0x20] sm:$0xff]   ;;  %v83_v16 = vld [vmem:[#allocation2 + $0x14] sm:$0x1]  ;;  %vm164_vm11 = vsmask.f32 7440 }
  0x29   :  { %1825 = vmatprep.subr.bf16.mxu1 %v1931_v4  ;;  %v72_v9 = vld [vmem:[#allocation2] sm:$0x1]  ;;  %v75_v10 = vld [vmem:[#allocation2 + $0xc] sm:$0x1]  ;;  %v80_v11 = vld [vmem:[#allocation2 + $0x8] sm:$0x1] }
  0x2a   :  { %v1935_v12 = vld [vmem:[#allocation7] sm:$0xff]   ;;  %v73_v13 = vsel %vm2136_vm2, 0, %v72_v9  ;;  %v76_v14 = vsel %vm2136_vm2, 0, %v75_v10  ;;  %v81_v15 = vsel %vm2142_vm4, 0, %v80_v11  ;;  %v84_v17 = vsel %vm2142_vm4, 0, %v83_v16  ;;  %v2154_v20 = vld [vmem:[#allocation7 + $0x58] sm:$0xff]   ;;  %vm2158_vm7 = vmor %vm70_vm1, %vm90_vm5 }
  0x2b   :  { %1814 = vmatpush3.bf16.msra.mxu0 %v1930_v3  ;;  %74 = vst [vmem:[#allocation2] sm:$0x1] %v73_v13  ;;  %77 = vst [vmem:[#allocation2 + $0xc] sm:$0x1] %v76_v14  ;;  %v86_v18 = vld [vmem:[#allocation4] sm:$0xf] }
  0x2c   :  { %1826 = vmatpush3.bf16.msra.mxu1 %v1931_v4  ;;  %1815 = vmatprep.subr.bf16.mxu0 %v1932_v5  ;;  %82 = vst [vmem:[#allocation2 + $0x8] sm:$0x1] %v81_v15  ;;  %v87_v19 = vld [vmem:[#allocation4 + $0x4] sm:$0xf]  ;;  %v88_v21 = vld [vmem:[#allocation4 + $0x8] sm:$0xf]  ;;  %vm2164_vm8 = vmand %vm132_vm6, %vm2549_vm3 }
  0x2d   :  { %1827 = vmatprep.subr.bf16.mxu1 %v1933_v6  ;;  %v89_v22 = vld [vmem:[#allocation4 + $0xc] sm:$0xf]  ;;  %v93_v23 = vshrl.u32 %v86_v18, 16  ;;  %v96_v24 = vshll.u32 %v86_v18, 16  ;;  %85 = vst [vmem:[#allocation2 + $0x14] sm:$0x1] %v84_v17  ;;  %vm2190_vm14 = vmor %vm163_vm10, %vm164_vm11 }
  0x2e   :  { %v101_v25 = vshrl.u32 %v87_v19, 16  ;;  %v104_v26 = vshll.u32 %v87_v19, 16  ;;  %v110_v27 = vshrl.u32 %v88_v21, 16  ;;  %v113_v28 = vshll.u32 %v88_v21, 16  ;;  %s2063_s0 = smov 104   ;;  %s2064_s2 = smov 120  }
  0x2f   :  { %1816 = vmatpush3.bf16.msra.mxu0 %v1932_v5  ;;  %v95_v29 = vrot.slane %v93_v23, 7  ;;  %v118_v30 = vshrl.u32 %v89_v22, 16  ;;  %v121_v31 = vshll.u32 %v89_v22, 16  ;;  %vm404_vm12 = vcmask 1042432   ;;  %s2065_s17 = smov 96   ;;  %s2066_s18 = smov 112  }
  0x30   :  { %1828 = vmatpush3.bf16.msra.mxu1 %v1933_v6  ;;  %1817 = vmatprep.subr.bf16.mxu0 %v1934_v8  ;;  %v103_v33 = vrot.slane %v101_v25, 7  ;;  %v112_v34 = vrot.slane %v110_v27, 7  ;;  %vm405_vm13 = vcmask 1046532   ;;  %s2067_s19 = smov 88   ;;  %s2068_s20 = smov 80   ;;  %vm839_vm0 = vcmask 1040384  }
  0x31   :  { %1829 = vmatprep.subr.bf16.mxu1 %v1935_v12  ;;  %v98_v35 = vor.u32 %v96_v24, %v95_v29  ;;  %v99_v36 = vrot.slane %v95_v29, 4  ;;  %v120_v37 = vrot.slane %v118_v30, 7  ;;  %vm2197_vm15 = vmor %vm404_vm12, %vm405_vm13  ;;  %s2069_s21 = smov 72   ;;  %s2070_s22 = smov 56   ;;  %vm727_vm5 = vcmask 130048   ;;  %v1965_v17 = vld [vmem:[#allocation9 + $0x90] sm:$0xff]  }
  0x32   :  { %v106_v39 = vor.u32 %v104_v26, %v103_v33  ;;  %v108_v40 = vrot.slane %v103_v33, 4  ;;  %v115_v41 = vor.u32 %v113_v28, %v112_v34  ;;  %v116_v42 = vrot.slane %v112_v34, 4  ;;  %v134_v44 = vld [vmem:[#allocation2] sm:$0xf]  ;;  %v142_v46 = vld [vmem:[#allocation2 + $0xc] sm:$0xf]  ;;  %vm847_vm4 = vmand %vm839_vm0, %vm2549_vm3 }
  0x33   :  { %1818 = vmatpush3.bf16.msra.mxu0 %v1934_v8  ;;  %v123_v43 = vor.u32 %v121_v31, %v120_v37  ;;  %v139_v45 = vld [vmem:[#allocation2 + $0x8] sm:$0x1]  ;;  %v135_v48 = vsel %vm2164_vm8, %v98_v35, %v134_v44  ;;  %v125_v53 = vrot.slane %v120_v37, 4  ;;  %s2071_s23 = smov 48   ;;  %s2072_s24 = smov 40   ;;  %vm733_vm10 = vcmask 326656  }
  0x34   :  { %1830 = vmatpush3.bf16.msra.mxu1 %v1935_v12  ;;  %1835 = vmatprep.subr.bf16.mxu0 %v2154_v20  ;;  %v107_v47 = vsel %vm2158_vm7, %v99_v36, %v106_v39  ;;  %v140_v49 = vsel %vm2136_vm2, %v108_v40, %v139_v45  ;;  %v143_v50 = vsel %vm2164_vm8, %v115_v41, %v142_v46  ;;  %v146_v51 = vld [vmem:[#allocation2 + $0x14] sm:$0x1]  ;;  %s2073_s25 = smov 32   ;;  %s2074_s26 = smov 24   ;;  %vm2551_vm8 = vcmask 261120  }
  0x35   :  { %v124_v52 = vsel %vm2158_vm7, %v116_v42, %v123_v43  ;;  %136 = vst [vmem:[#allocation2] sm:$0xf] %v135_v48  ;;  %138 = vst.msk [vmem:[#allocation2 + $0x4] sm:$0xf] %vm132_vm6, %v107_v47  ;;  %v147_v54 = vsel %vm2136_vm2, %v125_v53, %v146_v51  ;;  %v1939_v41 = vld [vmem:[#allocation7 + $0x50] sm:$0xff]   ;;  %v1940_v47 = vld [vmem:[#allocation7 + $0x48] sm:$0xff]  }
  0x36   :  { %141 = vst [vmem:[#allocation2 + $0x8] sm:$0x1] %v140_v49  ;;  %144 = vst [vmem:[#allocation2 + $0xc] sm:$0xf] %v143_v50  ;;  %s2075_s27 = smov 16   ;;  %s2076_s28 = smov 8  }
  0x37   :  { %145 = vst.msk [vmem:[#allocation2 + $0x10] sm:$0xf] %vm132_vm6, %v124_v52  ;;  %148 = vst [vmem:[#allocation2 + $0x14] sm:$0x1] %v147_v54  ;;  %v1941_v52 = vld [vmem:[#allocation7 + $0x40] sm:$0xff]   ;;  %vm2550_vm6 = vcmask 195584  }
  0x38   :  { %vm2316_vm2 = vmand %vm839_vm0, %vm70_vm1  ;;  %vm2548_vm1 = vcmask 64512   ;;  %vm735_vm11 = vcmask 392192   ;;  %vm737_vm12 = vcmask 457728   ;;  %vm740_vm13 = vcmask 588800  }
  0x39   :  { %vm742_vm0 = vcmask 654336   ;;  %vm2554_vm3 = vcmask 850944  }
  0x3c   :  { %v149_v55 = vld [vmem:[#allocation2] sm:$0xf]  ;;  %v150_v56 = vld [vmem:[#allocation2 + $0x4] sm:$0xf] }
  0x3d   :  { %v161_v57 = vld [vmem:[#allocation2 + $0x8] sm:$0x1]  ;;  %v167_v58 = vshrl.u32 %v149_v55, 16  ;;  %v170_v59 = vshll.u32 %v149_v55, 16  ;;  %v176_v60 = vshll.u32 %v150_v56, 16  ;;  %v180_v61 = vshrl.u32 %v150_v56, 16 }
  0x3e   :  { %v151_v62 = vld [vmem:[#allocation2 + $0xc] sm:$0xf]  ;;  %v186_v63 = vshll.u32 %v161_v57, 16  ;;  %v1705_v1 = vcombine.low %v149_v55, %v150_v56  ;;  %v2183_v2 = vld [vmem:[#allocation2 + $0x10] sm:$0xf]  ;;  %v412_v26 = vrot.slane %v161_v57, 5 }
  0x3f   :  { %v191_v3 = vshrl.u32 %v151_v62, 16  ;;  %v169_v4 = vrot.slane %v167_v58, 4  ;;  %v172_v5 = vrot.slane %v170_v59, 5  ;;  %v178_v0 = vrot.slane %v176_v60, 5  ;;  %v162_v7 = vld [vmem:[#allocation2 + $0x14] sm:$0x1] }
  0x40   :  { %v182_v6 = vrot.slane %v180_v61, 4  ;;  %v188_v8 = vrot.slane %v186_v63, 5  ;;  %1831 = vmatprep.mubr.msk.bf16.mxu1 %vm253_vm9, %v1705_v1  ;;  %v194_v10 = vshll.u32 %v151_v62, 16  ;;  %v200_v11 = vshll.u32 %v2183_v2, 16  ;;  %v398_v16 = vld [vmem:[#allocation2] sm:$0xe] }
  0x41   :  { %v193_v9 = vrot.slane %v191_v3, 4  ;;  %v173_v12 = vor.u32 %v172_v5, %v169_v4  ;;  %v204_v14 = vshrl.u32 %v2183_v2, 16  ;;  %v210_v15 = vshll.u32 %v162_v7, 16  ;;  %v399_v48 = vld [vmem:[#allocation2 + $0xc] sm:$0xe] }
  0x42   :  { %v183_v13 = vor.u32 %v182_v6, %v178_v0  ;;  %v196_v18 = vrot.slane %v194_v10, 5  ;;  %v202_v19 = vrot.slane %v200_v11, 5  ;;  %v1706_v21 = vcombine.low %v151_v62, %v2183_v2 }
  0x43   :  { %v174_v22 = vrot.slane %v173_v12, 4  ;;  %v206_v24 = vrot.slane %v204_v14, 4  ;;  %v1713_v28 = vrot.slane %v398_v16, 9  ;;  %v409_v29 = vrot.slane %v150_v56, 5 }
  0x44   :  { %v184_v23 = vrot.slane %v183_v13, 4  ;;  %v197_v27 = vor.u32 %v196_v18, %v193_v9  ;;  %1832 = vmatmul.mubr.msk.bf16.vlgmr.msra.gmra.mxu1 %vm253_vm9, %v1706_v21  ;;  %v212_v34 = vrot.slane %v210_v15, 5  ;;  %v416_v46 = vrot.slane %v2183_v2, 5 }
  0x45   :  { %v179_v30 = vsel %vm2190_vm14, %v174_v22, %v178_v0  ;;  %v207_v33 = vor.u32 %v206_v24, %v202_v19  ;;  %v410_v37 = vsel %vm2197_vm15, %v1713_v28, %v409_v29  ;;  %v411_v38 = vrot.slane %v409_v29, 4 }
  0x46   :  { %v189_v31 = vsel %vm2190_vm14, %v184_v23, %v188_v8  ;;  %v198_v36 = vrot.slane %v197_v27, 4  ;;  %v419_v49 = vrot.slane %v162_v7, 5  ;;  %v1714_v50 = vrot.slane %v399_v48, 9 }
  0x47   :  { %v1697_v35 = vcombine.low %v179_v30, %v189_v31  ;;  %v208_v39 = vrot.slane %v207_v33, 4  ;;  %v413_v42 = vsel %vm2197_vm15, %v411_v38, %v412_v26  ;;  %v418_v51 = vrot.slane %v416_v46, 4 }
  0x48   :  { %v203_v40 = vsel %vm2190_vm14, %v198_v36, %v202_v19  ;;  %v1715_v44 = vcombine.low %v410_v37, %v413_v42  ;;  %v417_v53 = vsel %vm2197_vm15, %v1714_v50, %v416_v46 }
  0x49   :  { %1819 = vmatprep.mubr.msk.bf16.mxu0 %vm253_vm9, %v1697_v35  ;;  %v213_v43 = vsel %vm2190_vm14, %v208_v39, %v212_v34 }
  0x4a   :  { %v1698_v45 = vcombine.low %v203_v40, %v213_v43 }
  0x4c   :  { %1820 = vmatmul.mubr.msk.bf16.vlgmr.msra.gmra.mxu0 %vm253_vm9, %v1698_v45 }
  0x4d   :  { %1836 = vmatpush3.bf16.msra.mxu0 %v2154_v20  ;;  %1843 = vmatprep.mubr.msk.bf16.mxu0 %vm253_vm9, %v1715_v44  ;;  %v420_v20 = vsel %vm2197_vm15, %v418_v51, %v419_v49 }
  0x4e   :  { %1837 = vmatprep.subr.bf16.mxu0 %v1939_v41  ;;  %v1716_v54 = vcombine.low %v417_v53, %v420_v20 }
  0x51   :  { %1838 = vmatpush3.bf16.msra.mxu0 %v1939_v41 }
  0x52   :  { %1839 = vmatprep.subr.bf16.mxu0 %v1940_v47 }
  0x55   :  { %1840 = vmatpush3.bf16.msra.mxu0 %v1940_v47 }
  0x56   :  { %1841 = vmatprep.subr.bf16.mxu0 %v1941_v52 }
  0x59   :  { %1842 = vmatpush3.bf16.msra.mxu0 %v1941_v52 }
  0x5c   :  { %1844 = vmatmul.mubr.msk.bf16.vlgmr.msra.gmra.mxu0 %vm253_vm9, %v1716_v54 }
 0x104   :  { %v1833_v56 = vpop.f32.mrf.mxu1 }
 0x106   :  { %v383_v58 = vpop.f32.mrf.mxu1 }
 0x108   :  { %v1834_v60 = vpop.f32.mrf.mxu1 }
 0x10a   :  { %v386_v63 = vpop.f32.mrf.mxu1 }
 0x10c   :  { %v1821_v55 = vpop.f32.mrf.mxu0 }
 0x10d   :  { %v392_v4 = vadd.f32 %v1833_v56, %v1821_v55 }
 0x10e   :  { %v294_v57 = vpop.f32.mrf.mxu0 }
 0x10f   :  { %v384_v2 = vadd.f32 %v383_v58, %v294_v57 }
 0x110   :  { %v1822_v59 = vpop.f32.mrf.mxu0 }
 0x111   :  { %v395_v7 = vadd.f32 %v1834_v60, %v1822_v59 }
 0x112   :  { %v297_v61 = vpop.f32.mrf.mxu0 }
 0x113   :  { %v387_v5 = vadd.f32 %v386_v63, %v297_v61 }
 0x11c   :  { %v1845_v62 = vpop.f32.mrf.mxu0 }
 0x11d   :  { %v2226_v8 = vadd.f32 %v1845_v62, %v392_v4 }
 0x11e   :  { %v500_v1 = vpop.f32.mrf.mxu0 }
 0x11f   :  { %v2224_v0 = vadd.f32 %v500_v1, %v384_v2  ;;  %v532_v14 = vmul.f32 %v2226_v8, %v2226_v8 }
 0x120   :  { %v1846_v3 = vpop.f32.mrf.mxu0 }
 0x121   :  { %v530_v10 = vmul.f32 %v2224_v0, %v2224_v0  ;;  %v2232_v11 = vadd.f32 %v1846_v3, %v395_v7 }
 0x122   :  { %v503_v6 = vpop.f32.mrf.mxu0 }
 0x123   :  { %v2228_v9 = vadd.f32 %v503_v6, %v387_v5  ;;  %v533_v18 = vmul.f32 %v2232_v11, %v2232_v11 }
 0x125   :  { %v521_v12 = vadd.f32 %v2228_v9, %v2224_v0  ;;  %v531_v13 = vmul.f32 %v2228_v9, %v2228_v9 }
 0x127   :  { %v522_v15 = vadd.f32 %v521_v12, %v2226_v8  ;;  %v534_v16 = vadd.f32 %v531_v13, %v530_v10 }
 0x129   :  { %v523_v19 = vadd.f32 %v522_v15, %v2232_v11  ;;  %v535_v21 = vadd.f32 %v534_v16, %v532_v14 }
 0x12b   :  { %v524_v22 = vrot.slane %v523_v19, 4  ;;  %v536_v23 = vadd.f32 %v535_v21, %v533_v18 }
 0x12d   :  { %v525_v24 = vadd.f32 %v524_v22, %v523_v19  ;;  %v537_v26 = vrot.slane %v536_v23, 4 }
 0x12f   :  { %v526_v27 = vrot.slane %v525_v24, 2  ;;  %v538_v28 = vadd.f32 %v537_v26, %v536_v23 }
 0x131   :  { %v527_v29 = vadd.f32 %v526_v27, %v525_v24  ;;  %v539_v30 = vrot.slane %v538_v28, 2 }
 0x133   :  { %v528_v31 = vrot.slane %v527_v29, 1  ;;  %v540_v34 = vadd.f32 %v539_v30, %v538_v28 }
 0x135   :  { %v529_v33 = vadd.f32 %v528_v31, %v527_v29  ;;  %v541_v35 = vrot.slane %v540_v34, 1 }
 0x137   :  { %552 = vrot.lane.b32.xlu1 %v529_v33, %s2063_s0  ;;  %544 = vrot.lane.b32.xlu0 %v529_v33, %s2064_s2  ;;  %v542_v36 = vadd.f32 %v541_v35, %v540_v34 }
 0x13b   :  { %556 = vrot.lane.b32.xlu1 %v529_v33, %s2065_s17  ;;  %548 = vrot.lane.b32.xlu0 %v529_v33, %s2066_s18 }
 0x13f   :  { %560 = vrot.lane.b32.xlu1 %v529_v33, %s2067_s19  ;;  %610 = vrot.lane.b32.xlu0 %v542_v36, %s2066_s18 }
 0x143   :  { %564 = vrot.lane.b32.xlu1 %v529_v33, %s2068_s20  ;;  %614 = vrot.lane.b32.xlu0 %v542_v36, %s2063_s0 }
 0x147   :  { %568 = vrot.lane.b32.xlu1 %v529_v33, %s2069_s21  ;;  %618 = vrot.lane.b32.xlu0 %v542_v36, %s2065_s17 }
 0x14b   :  { %572 = vrot.lane.b32.xlu1 %v529_v33, %s2060_s29  ;;  %622 = vrot.lane.b32.xlu0 %v542_v36, %s2067_s19 }
 0x14f   :  { %576 = vrot.lane.b32.xlu1 %v529_v33, %s2070_s22  ;;  %626 = vrot.lane.b32.xlu0 %v542_v36, %s2068_s20 }
 0x153   :  { %606 = vrot.lane.b32.xlu1 %v542_v36, %s2064_s2  ;;  %630 = vrot.lane.b32.xlu0 %v542_v36, %s2069_s21 }
 0x157   :  { %580 = vrot.lane.b32.xlu1 %v529_v33, %s2071_s23  ;;  %634 = vrot.lane.b32.xlu0 %v542_v36, %s2060_s29 }
 0x15b   :  { %584 = vrot.lane.b32.xlu1 %v529_v33, %s2072_s24  ;;  %638 = vrot.lane.b32.xlu0 %v542_v36, %s2070_s22 }
 0x15f   :  { %588 = vrot.lane.b32.xlu1 %v529_v33, %s2073_s25  ;;  %642 = vrot.lane.b32.xlu0 %v542_v36, %s2071_s23 }
 0x163   :  { %592 = vrot.lane.b32.xlu1 %v529_v33, %s2074_s26  ;;  %646 = vrot.lane.b32.xlu0 %v542_v36, %s2072_s24 }
 0x167   :  { %596 = vrot.lane.b32.xlu1 %v529_v33, %s2075_s27  ;;  %650 = vrot.lane.b32.xlu0 %v542_v36, %s2073_s25 }
 0x16b   :  { %600 = vrot.lane.b32.xlu1 %v529_v33, %s2076_s28  ;;  %654 = vrot.lane.b32.xlu0 %v542_v36, %s2074_s26 }
 0x16f   :  { %662 = vrot.lane.b32.xlu1 %v542_v36, %s2076_s28  ;;  %658 = vrot.lane.b32.xlu0 %v542_v36, %s2075_s27 }
 0x1a9   :  { %v553_v37 = vpop.permute.xlu1 %552  ;;  %v545_v38 = vpop.permute.xlu0 %544 }
 0x1aa   :  { %v547_v47 = vadd.f32 %v545_v38, %v529_v33 }
 0x1ad   :  { %v557_v39 = vpop.permute.xlu1 %556  ;;  %v549_v40 = vpop.permute.xlu0 %548 }
 0x1ae   :  { %v551_v48 = vadd.f32 %v549_v40, %v547_v47 }
 0x1b0   :  { %v555_v51 = vadd.f32 %v553_v37, %v551_v48  ;;  %v519_v48 = vld [vmem:[%s2543_s3] sm:$0x1] }
 0x1b1   :  { %v561_v41 = vpop.permute.xlu1 %560  ;;  %v611_v42 = vpop.permute.xlu0 %610 }
 0x1b2   :  { %v559_v20 = vadd.f32 %v557_v39, %v555_v51 }
 0x1b4   :  { %v563_v57 = vadd.f32 %v561_v41, %v559_v20 }
 0x1b5   :  { %v565_v43 = vpop.permute.xlu1 %564  ;;  %v615_v44 = vpop.permute.xlu0 %614 }
 0x1b6   :  { %v567_v62 = vadd.f32 %v565_v43, %v563_v57  ;;  %v1943_v57 = vld [vmem:[#allocation9 + $0x30] sm:$0xff]  }
 0x1b9   :  { %v569_v45 = vpop.permute.xlu1 %568  ;;  %v619_v46 = vpop.permute.xlu0 %618 }
 0x1ba   :  { %v571_v3 = vadd.f32 %v569_v45, %v567_v62  ;;  %v851_v62 = vld [vmem:[#allocation3 + $0x14] sm:$0x1] }
 0x1bd   :  { %v573_v49 = vpop.permute.xlu1 %572  ;;  %v623_v50 = vpop.permute.xlu0 %622 }
 0x1be   :  { %v575_v5 = vadd.f32 %v573_v49, %v571_v3  ;;  %v852_v3 = vsel %vm847_vm4, 0, %v851_v62 }
 0x1bf   :  { %853 = vst [vmem:[#allocation3 + $0x14] sm:$0x1] %v852_v3 }
 0x1c1   :  { %v577_v52 = vpop.permute.xlu1 %576  ;;  %v627_v53 = vpop.permute.xlu0 %626 }
 0x1c2   :  { %v579_v12 = vadd.f32 %v577_v52, %v575_v5  ;;  %v520_v52 = vld [vmem:[%s2544_s4] sm:$0x1]  ;;  %v1945_v5 = vld [vmem:[#allocation9 + $0x28] sm:$0xff]  }
 0x1c5   :  { %v607_v54 = vpop.permute.xlu1 %606  ;;  %v631_v55 = vpop.permute.xlu0 %630 }
 0x1c6   :  { %v609_v56 = vadd.f32 %v607_v54, %v542_v36 }
 0x1c8   :  { %v613_v58 = vadd.f32 %v611_v42, %v609_v56  ;;  %v1942_v56 = vld [vmem:[#allocation9 + $0x38] sm:$0xff]  }
 0x1c9   :  { %v581_v59 = vpop.permute.xlu1 %580  ;;  %v635_v60 = vpop.permute.xlu0 %634  ;;  %1867 = vmatprep.subr.bf16.mxu0 %v1942_v56 }
 0x1ca   :  { %v617_v61 = vadd.f32 %v615_v44, %v613_v58  ;;  %v583_v14 = vadd.f32 %v581_v59, %v579_v12  ;;  %1868 = vmatpush3.bf16.msra.mxu0 %v1942_v56  ;;  %v841_v58 = vld [vmem:[#allocation3] sm:$0x1]  ;;  %v844_v59 = vld [vmem:[#allocation3 + $0xc] sm:$0x1] }
 0x1cb   :  { %1869 = vmatprep.subr.bf16.mxu0 %v1943_v57  ;;  %v1949_v12 = vld [vmem:[#allocation9 + $0x18] sm:$0xff]  }
 0x1cc   :  { %v621_v63 = vadd.f32 %v619_v46, %v617_v61  ;;  %v676_v46 = vlaneseq  ;;  %v848_v61 = vld [vmem:[#allocation3 + $0x8] sm:$0x1] }
 0x1cd   :  { %v585_v1 = vpop.permute.xlu1 %584  ;;  %v639_v2 = vpop.permute.xlu0 %638 }
 0x1ce   :  { %v625_v4 = vadd.f32 %v623_v50, %v621_v63  ;;  %v587_v19 = vadd.f32 %v585_v1, %v583_v14  ;;  %v677_v47 = vshrl.u32 %v676_v46, 7  ;;  %v842_v63 = vsel %vm2316_vm2, 0, %v841_v58  ;;  %1870 = vmatpush3.bf16.msra.mxu0 %v1943_v57  ;;  %v1951_v14 = vld [vmem:[#allocation9 + $0x10] sm:$0xff]  }
 0x1cf   :  { %v845_v1 = vsel %vm2316_vm2, 0, %v844_v59  ;;  %843 = vst [vmem:[#allocation3] sm:$0x1] %v842_v63  ;;  %1871 = vmatprep.subr.bf16.mxu0 %v1945_v5 }
 0x1d0   :  { %v629_v6 = vadd.f32 %v627_v53, %v625_v4  ;;  %v2277_v49 = vsub.s32 0, %v677_v47  ;;  %846 = vst [vmem:[#allocation3 + $0xc] sm:$0x1] %v845_v1  ;;  %v1944_v4 = vld [vmem:[#allocation9 + $0x78] sm:$0xff]  }
 0x1d1   :  { %v589_v7 = vpop.permute.xlu1 %588  ;;  %v643_v10 = vpop.permute.xlu0 %642  ;;  %1847 = vmatprep.subr.bf16.mxu1 %v1944_v4 }
 0x1d2   :  { %v633_v13 = vadd.f32 %v631_v55, %v629_v6  ;;  %v591_v22 = vadd.f32 %v589_v7, %v587_v19  ;;  %1848 = vmatpush3.bf16.msra.mxu1 %v1944_v4  ;;  %1872 = vmatpush3.bf16.msra.mxu0 %v1945_v5  ;;  %v1946_v6 = vld [vmem:[#allocation9 + $0x70] sm:$0xff]   ;;  %v1947_v7 = vld [vmem:[#allocation9 + $0x20] sm:$0xff]  }
 0x1d3   :  { %1849 = vmatprep.subr.bf16.mxu1 %v1946_v6  ;;  %1873 = vmatprep.subr.bf16.mxu0 %v1947_v7  ;;  %v1955_v19 = vld [vmem:[#allocation9] sm:$0xff]  }
 0x1d4   :  { %v637_v15 = vadd.f32 %v635_v60, %v633_v13  ;;  %v1950_v13 = vld [vmem:[#allocation9 + $0x60] sm:$0xff]  }
 0x1d5   :  { %v593_v16 = vpop.permute.xlu1 %592  ;;  %v647_v18 = vpop.permute.xlu0 %646 }
 0x1d6   :  { %v641_v21 = vadd.f32 %v639_v2, %v637_v15  ;;  %v595_v27 = vadd.f32 %v593_v16, %v591_v22  ;;  %v849_v2 = vsel %vm847_vm4, 0, %v848_v61  ;;  %1850 = vmatpush3.bf16.msra.mxu1 %v1946_v6  ;;  %1874 = vmatpush3.bf16.msra.mxu0 %v1947_v7  ;;  %v1952_v15 = vld [vmem:[#allocation9 + $0x58] sm:$0xff]   ;;  %v1953_v16 = vld [vmem:[#allocation9 + $0x8] sm:$0xff]   ;;  %v1959_v22 = vld [vmem:[#allocation9 + $0x40] sm:$0xff]   ;;  %vm744_vm4 = vcmask 719872  }
 0x1d7   :  { %850 = vst [vmem:[#allocation3 + $0x8] sm:$0x1] %v849_v2  ;;  %1875 = vmatprep.subr.bf16.mxu0 %v1949_v12 }
 0x1d8   :  { %v645_v23 = vadd.f32 %v643_v10, %v641_v21  ;;  %v1948_v10 = vld [vmem:[#allocation9 + $0x68] sm:$0xff]  }
 0x1d9   :  { %v597_v24 = vpop.permute.xlu1 %596  ;;  %v651_v26 = vpop.permute.xlu0 %650  ;;  %1851 = vmatprep.subr.bf16.mxu1 %v1948_v10  ;;  %v1957_v21 = vld [vmem:[#allocation9 + $0x48] sm:$0xff]  }
 0x1da   :  { %v649_v28 = vadd.f32 %v647_v18, %v645_v23  ;;  %v599_v29 = vadd.f32 %v597_v24, %v595_v27  ;;  %1852 = vmatpush3.bf16.msra.mxu1 %v1948_v10  ;;  %1876 = vmatpush3.bf16.msra.mxu0 %v1949_v12  ;;  %v1954_v18 = vld [vmem:[#allocation9 + $0x50] sm:$0xff]   ;;  %v2331_v23 = vld [vmem:[#allocation9 + $0xb8] sm:$0xff]  }
 0x1db   :  { %1853 = vmatprep.subr.bf16.mxu1 %v1950_v13  ;;  %1877 = vmatprep.subr.bf16.mxu0 %v1951_v14 }
 0x1dc   :  { %v653_v30 = vadd.f32 %v651_v26, %v649_v28 }
 0x1dd   :  { %v601_v31 = vpop.permute.xlu1 %600  ;;  %v655_v33 = vpop.permute.xlu0 %654 }
 0x1de   :  { %v603_v34 = vadd.f32 %v601_v31, %v599_v29  ;;  %v657_v35 = vadd.f32 %v655_v33, %v653_v30  ;;  %1854 = vmatpush3.bf16.msra.mxu1 %v1950_v13  ;;  %1878 = vmatpush3.bf16.msra.mxu0 %v1951_v14 }
 0x1df   :  { %1855 = vmatprep.subr.bf16.mxu1 %v1952_v15  ;;  %1879 = vmatprep.subr.bf16.mxu0 %v1953_v16 }
 0x1e0   :  { %v604_v37 = vmul.f32 0.001953125, %v603_v34 }
 0x1e1   :  { %v659_v36 = vpop.permute.xlu0 %658  ;;  %v663_v39 = vpop.permute.xlu1 %662 }
 0x1e2   :  { %v661_v38 = vadd.f32 %v659_v36, %v657_v35  ;;  %v667_v41 = vmul.f32 %v604_v37, %v604_v37  ;;  %1856 = vmatpush3.bf16.msra.mxu1 %v1952_v15  ;;  %1880 = vmatpush3.bf16.msra.mxu0 %v1953_v16 }
 0x1e3   :  { %1857 = vmatprep.subr.bf16.mxu1 %v1954_v18  ;;  %1881 = vmatprep.subr.bf16.mxu0 %v1955_v19 }
 0x1e4   :  { %v665_v40 = vadd.f32 %v663_v39, %v661_v38 }
 0x1e6   :  { %v666_v42 = vmul.f32 0.001953125, %v665_v40  ;;  %1858 = vmatpush3.bf16.msra.mxu1 %v1954_v18  ;;  %1882 = vmatpush3.bf16.msra.mxu0 %v1955_v19 }
 0x1e7   :  { %1859 = vmatprep.subr.bf16.mxu1 %v1957_v21 }
 0x1e8   :  { %v668_v43 = vsub.f32 %v666_v42, %v667_v41 }
 0x1ea   :  { %v669_v44 = vmax.f32 %v668_v43, 0.0  ;;  %1860 = vmatpush3.bf16.msra.mxu1 %v1957_v21 }
 0x1eb   :  { %1861 = vmatprep.subr.bf16.mxu1 %v1959_v22 }
 0x1ec   :  { %v670_v45 = vadd.f32 1e-05, %v669_v44 }
 0x1ee   :  { %1968 = vrsqrt.f32 %v670_v45  ;;  %1862 = vmatpush3.bf16.msra.mxu1 %v1959_v22 }
 0x1ef   :  { %1887 = vmatprep.subr.bf16.mxu1 %v2331_v23 }
 0x1fb   :  { %v1969_v50 = vpop.eup %1968 }
 0x1fc   :  { %v2279_v51 = vmul.f32 %v1969_v50, %v519_v48 }
 0x1fe   :  { %v673_v53 = vmul.f32 %v2279_v51, %v604_v37  ;;  %v679_v20 = vrot.slane %v2279_v51, %v2277_v49 }
 0x200   :  { %v2287_v54 = vsub.f32 %v520_v52, %v673_v53  ;;  %683 = vrot.lane.b32.xlu1 %v679_v20, %s2075_s27  ;;  %680 = vrot.lane.b32.xlu0 %v679_v20, %s2076_s28 }
 0x202   :  { %v766_v55 = vrot.slane %v2287_v54, %v2277_v49 }
 0x204   :  { %686 = vrot.lane.b32.xlu0 %v679_v20, %s2074_s26  ;;  %767 = vrot.lane.b32.xlu1 %v766_v55, %s2076_s28 }
 0x208   :  { %689 = vrot.lane.b32.xlu0 %v679_v20, %s2073_s25  ;;  %770 = vrot.lane.b32.xlu1 %v766_v55, %s2075_s27 }
 0x20c   :  { %692 = vrot.lane.b32.xlu0 %v679_v20, %s2072_s24  ;;  %773 = vrot.lane.b32.xlu1 %v766_v55, %s2074_s26 }
 0x210   :  { %695 = vrot.lane.b32.xlu0 %v679_v20, %s2071_s23  ;;  %776 = vrot.lane.b32.xlu1 %v766_v55, %s2073_s25 }
 0x214   :  { %698 = vrot.lane.b32.xlu0 %v679_v20, %s2070_s22  ;;  %779 = vrot.lane.b32.xlu1 %v766_v55, %s2072_s24 }
 0x218   :  { %701 = vrot.lane.b32.xlu0 %v679_v20, %s2060_s29  ;;  %782 = vrot.lane.b32.xlu1 %v766_v55, %s2071_s23 }
 0x21c   :  { %704 = vrot.lane.b32.xlu0 %v679_v20, %s2069_s21  ;;  %785 = vrot.lane.b32.xlu1 %v766_v55, %s2070_s22 }
 0x220   :  { %707 = vrot.lane.b32.xlu0 %v679_v20, %s2068_s20  ;;  %788 = vrot.lane.b32.xlu1 %v766_v55, %s2060_s29 }
 0x224   :  { %710 = vrot.lane.b32.xlu0 %v679_v20, %s2067_s19  ;;  %791 = vrot.lane.b32.xlu1 %v766_v55, %s2069_s21 }
 0x228   :  { %713 = vrot.lane.b32.xlu0 %v679_v20, %s2065_s17  ;;  %794 = vrot.lane.b32.xlu1 %v766_v55, %s2068_s20 }
 0x22c   :  { %716 = vrot.lane.b32.xlu0 %v679_v20, %s2063_s0  ;;  %797 = vrot.lane.b32.xlu1 %v766_v55, %s2067_s19 }
 0x230   :  { %719 = vrot.lane.b32.xlu0 %v679_v20, %s2066_s18  ;;  %800 = vrot.lane.b32.xlu1 %v766_v55, %s2065_s17 }
 0x234   :  { %722 = vrot.lane.b32.xlu0 %v679_v20, %s2064_s2  ;;  %803 = vrot.lane.b32.xlu1 %v766_v55, %s2063_s0 }
 0x238   :  { %806 = vrot.lane.b32.xlu0 %v766_v55, %s2066_s18  ;;  %809 = vrot.lane.b32.xlu1 %v766_v55, %s2064_s2 }
 0x272   :  { %v684_v24 = vpop.permute.xlu1 %683  ;;  %v681_v26 = vpop.permute.xlu0 %680 }
 0x273   :  { %v726_v46 = vsel %vm2548_vm1, %v2279_v51, %v681_v26 }
 0x274   :  { %v728_v47 = vsel %vm727_vm5, %v726_v46, %v684_v24 }
 0x276   :  { %v687_v27 = vpop.permute.xlu0 %686  ;;  %v768_v28 = vpop.permute.xlu1 %767 }
 0x277   :  { %v730_v52 = vsel %vm2550_vm6, %v728_v47, %v687_v27  ;;  %v812_v55 = vsel %vm2548_vm1, %v2287_v54, %v768_v28  ;;  %vm746_vm1 = vcmask 785408  }
 0x27a   :  { %v690_v29 = vpop.permute.xlu0 %689  ;;  %v771_v30 = vpop.permute.xlu1 %770 }
 0x27b   :  { %v732_v53 = vsel %vm2551_vm8, %v730_v52, %v690_v29  ;;  %v813_v58 = vsel %vm727_vm5, %v812_v55, %v771_v30 }
 0x27e   :  { %v693_v31 = vpop.permute.xlu0 %692  ;;  %v774_v33 = vpop.permute.xlu1 %773 }
 0x27f   :  { %v734_v20 = vsel %vm733_vm10, %v732_v53, %v693_v31  ;;  %v814_v61 = vsel %vm2550_vm6, %v813_v58, %v774_v33  ;;  %vm2553_vm6 = vcmask 916480  }
 0x282   :  { %v696_v34 = vpop.permute.xlu0 %695  ;;  %v777_v35 = vpop.permute.xlu1 %776 }
 0x283   :  { %v736_v51 = vsel %vm735_vm11, %v734_v20, %v696_v34  ;;  %v815_v63 = vsel %vm2551_vm8, %v814_v61, %v777_v35  ;;  %vm2552_vm8 = vcmask 982016  }
 0x286   :  { %v699_v36 = vpop.permute.xlu0 %698  ;;  %v780_v37 = vpop.permute.xlu1 %779 }
 0x287   :  { %v738_v59 = vsel %vm737_vm12, %v736_v51, %v699_v36  ;;  %v816_v54 = vsel %vm733_vm10, %v815_v63, %v780_v37  ;;  %v915_v63 = vld [vmem:[#allocation3 + $0xc] sm:$0xf] }
 0x28a   :  { %v702_v38 = vpop.permute.xlu0 %701  ;;  %v783_v39 = vpop.permute.xlu1 %782 }
 0x28b   :  { %v739_v62 = vsel %vm253_vm9, %v738_v59, %v702_v38  ;;  %v817_v5 = vsel %vm735_vm11, %v816_v54, %v783_v39 }
 0x28e   :  { %v705_v40 = vpop.permute.xlu0 %704  ;;  %v786_v41 = vpop.permute.xlu1 %785 }
 0x28f   :  { %v741_v1 = vsel %vm740_vm13, %v739_v62, %v705_v40  ;;  %v818_v7 = vsel %vm737_vm12, %v817_v5, %v786_v41 }
 0x292   :  { %v708_v42 = vpop.permute.xlu0 %707  ;;  %v789_v43 = vpop.permute.xlu1 %788 }
 0x293   :  { %v743_v2 = vsel %vm742_vm0, %v741_v1, %v708_v42  ;;  %v819_v12 = vsel %vm253_vm9, %v818_v7, %v789_v43  ;;  %v919_v1 = vld [vmem:[#allocation3 + $0x14] sm:$0x1] }
 0x296   :  { %v711_v44 = vpop.permute.xlu0 %710  ;;  %v792_v45 = vpop.permute.xlu1 %791 }
 0x297   :  { %v745_v6 = vsel %vm744_vm4, %v743_v2, %v711_v44  ;;  %v820_v14 = vsel %vm740_vm13, %v819_v12, %v792_v45 }
 0x29a   :  { %v714_v48 = vpop.permute.xlu0 %713  ;;  %v795_v50 = vpop.permute.xlu1 %794 }
 0x29b   :  { %v747_v10 = vsel %vm746_vm1, %v745_v6, %v714_v48  ;;  %v821_v19 = vsel %vm742_vm0, %v820_v14, %v795_v50 }
 0x29e   :  { %v717_v56 = vpop.permute.xlu0 %716  ;;  %v798_v57 = vpop.permute.xlu1 %797 }
 0x29f   :  { %v749_v13 = vsel %vm2554_vm3, %v747_v10, %v717_v56  ;;  %v822_v22 = vsel %vm744_vm4, %v821_v19, %v798_v57  ;;  %v912_v57 = vld [vmem:[#allocation3 + $0x8] sm:$0x1] }
 0x2a2   :  { %v720_v3 = vpop.permute.xlu0 %719  ;;  %v801_v4 = vpop.permute.xlu1 %800 }
 0x2a3   :  { %v751_v15 = vsel %vm2553_vm6, %v749_v13, %v720_v3  ;;  %v823_v26 = vsel %vm746_vm1, %v822_v22, %v801_v4 }
 0x2a6   :  { %v723_v16 = vpop.permute.xlu0 %722  ;;  %v804_v18 = vpop.permute.xlu1 %803 }
 0x2a7   :  { %v753_v21 = vsel %vm2552_vm8, %v751_v15, %v723_v16  ;;  %v824_v27 = vsel %vm2554_vm3, %v823_v26, %v804_v18 }
 0x2a8   :  { %v757_v24 = vrot.slane %v753_v21, %v2277_v49 }
 0x2aa   :  { %v807_v28 = vpop.permute.xlu0 %806  ;;  %v810_v29 = vpop.permute.xlu1 %809  ;;  %v758_v31 = vmul.f32 %v757_v24, %v2224_v0  ;;  %v759_v34 = vmul.f32 %v757_v24, %v2228_v9  ;;  %v760_v35 = vmul.f32 %v757_v24, %v2226_v8  ;;  %v761_v36 = vmul.f32 %v757_v24, %v2232_v11  ;;  %v908_v11 = vld [vmem:[#allocation3] sm:$0xf] }
 0x2ab   :  { %v825_v30 = vsel %vm2553_vm6, %v824_v27, %v807_v28  ;;  %vm2569_vm6 = vsmask.f32 7938 }
 0x2ac   :  { %v826_v33 = vsel %vm2552_vm8, %v825_v30, %v810_v29  ;;  %vm906_vm8 = vcmask 1043456  }
 0x2ad   :  { %v830_v37 = vrot.slane %v826_v33, %v2277_v49  ;;  %vm2373_vm3 = vmand %vm906_vm8, %vm2569_vm6  ;;  %vm2579_vm8 = vcmask 916480  }
 0x2af   :  { %v831_v38 = vadd.f32 %v830_v37, %v758_v31  ;;  %v832_v39 = vadd.f32 %v830_v37, %v759_v34  ;;  %v833_v40 = vadd.f32 %v830_v37, %v760_v35  ;;  %v834_v41 = vadd.f32 %v830_v37, %v761_v36 }
 0x2b1   :  { %v835_v42 = vmax.f32 %v831_v38, 0.0  ;;  %v836_v43 = vmax.f32 %v832_v39, 0.0  ;;  %v837_v44 = vmax.f32 %v833_v40, 0.0  ;;  %v838_v45 = vmax.f32 %v834_v41, 0.0 }
 0x2b3   :  { %v1759_v46 = vpack.c.bf16 %v835_v42, %v835_v42  ;;  %v1760_v0 = vpack.c.bf16 %v836_v43, %v836_v43  ;;  %v1761_v47 = vpack.c.bf16 %v837_v44, %v837_v44  ;;  %v1762_v48 = vpack.c.bf16 %v838_v45, %v838_v45 }
 0x2b5   :  { %v867_v9 = vshrl.u32 %v1759_v46, 16  ;;  %v875_v50 = vshrl.u32 %v1760_v0, 16  ;;  %v884_v8 = vshrl.u32 %v1761_v47, 16  ;;  %v892_v52 = vshrl.u32 %v1762_v48, 16 }
 0x2b6   :  { %v870_v20 = vshll.u32 %v1759_v46, 16  ;;  %v878_v51 = vshll.u32 %v1760_v0, 16  ;;  %v887_v59 = vshll.u32 %v1761_v47, 16  ;;  %v895_v62 = vshll.u32 %v1762_v48, 16 }
 0x2b7   :  { %v869_v53 = vrot.slane %v867_v9, 7  ;;  %v877_v55 = vrot.slane %v875_v50, 7  ;;  %v886_v58 = vrot.slane %v884_v8, 7  ;;  %v894_v61 = vrot.slane %v892_v52, 7 }
 0x2b9   :  { %v872_v54 = vor.u32 %v870_v20, %v869_v53  ;;  %v873_v2 = vrot.slane %v869_v53, 4  ;;  %v880_v3 = vor.u32 %v878_v51, %v877_v55  ;;  %v882_v4 = vrot.slane %v877_v55, 4 }
 0x2ba   :  { %v889_v5 = vor.u32 %v887_v59, %v886_v58  ;;  %v890_v6 = vrot.slane %v886_v58, 4  ;;  %v897_v7 = vor.u32 %v895_v62, %v894_v61  ;;  %v899_v10 = vrot.slane %v894_v61, 4 }
 0x2bb   :  { %v881_v12 = vsel %vm2158_vm7, %v873_v2, %v880_v3  ;;  %v909_v13 = vsel %vm2373_vm3, %v872_v54, %v908_v11  ;;  %v913_v14 = vsel %vm2316_vm2, %v882_v4, %v912_v57  ;;  %v1961_v4 = vld [vmem:[#allocation9 + $0xb0] sm:$0xff]  }
 0x2bc   :  { %v898_v15 = vsel %vm2158_vm7, %v890_v6, %v897_v7  ;;  %910 = vst [vmem:[#allocation3] sm:$0xf] %v909_v13  ;;  %911 = vst [vmem:[#allocation3 + $0x4] sm:$0xf] %v881_v12  ;;  %v916_v16 = vsel %vm2373_vm3, %v889_v5, %v915_v63  ;;  %v920_v18 = vsel %vm2316_vm2, %v899_v10, %v919_v1  ;;  %v1962_v6 = vld [vmem:[#allocation9 + $0xa8] sm:$0xff]   ;;  %v1963_v7 = vld [vmem:[#allocation9 + $0xa0] sm:$0xff]  }
 0x2bd   :  { %914 = vst [vmem:[#allocation3 + $0x8] sm:$0x1] %v913_v14  ;;  %917 = vst [vmem:[#allocation3 + $0xc] sm:$0xf] %v916_v16  ;;  %v1964_v10 = vld [vmem:[#allocation9 + $0x98] sm:$0xff]   ;;  %v1966_v12 = vld [vmem:[#allocation9 + $0x88] sm:$0xff]  }
 0x2be   :  { %918 = vst [vmem:[#allocation3 + $0x10] sm:$0xf] %v898_v15  ;;  %921 = vst [vmem:[#allocation3 + $0x14] sm:$0x1] %v920_v18  ;;  %vm2572_vm3 = vcmask 64512   ;;  %vm2573_vm7 = vcmask 195584  }
 0x2bf   :  { %vm2576_vm2 = vmmov %vm2573_vm7 }
 0x2c3   :  { %v922_v19 = vld [vmem:[#allocation3] sm:$0xf]  ;;  %v923_v21 = vld [vmem:[#allocation3 + $0x4] sm:$0xf] }
 0x2c4   :  { %v942_v22 = vld [vmem:[#allocation3 + $0x8] sm:$0x1]  ;;  %v945_v24 = vshrl.u32 %v922_v19, 16  ;;  %v948_v26 = vshll.u32 %v922_v19, 16  ;;  %v958_v27 = vshrl.u32 %v923_v21, 16  ;;  %v1737_v32 = vcombine.low %v922_v19, %v923_v21 }
 0x2c5   :  { %v924_v28 = vld [vmem:[#allocation3 + $0xc] sm:$0xf]  ;;  %v2389_v29 = vld [vmem:[#allocation3 + $0x10] sm:$0xf]  ;;  %v954_v33 = vshll.u32 %v923_v21, 16  ;;  %v964_v34 = vshll.u32 %v942_v22, 16 }
 0x2c6   :  { %v969_v30 = vshrl.u32 %v924_v28, 16  ;;  %v972_v31 = vshll.u32 %v924_v28, 16  ;;  %v947_v35 = vrot.slane %v945_v24, 4  ;;  %v950_v60 = vrot.slane %v948_v26, 5  ;;  %1883 = vmatprep.mubr.bf16.mxu0 %v1737_v32  ;;  %v943_v42 = vld [vmem:[#allocation3 + $0x14] sm:$0x1] }
 0x2c7   :  { %v982_v36 = vshrl.u32 %v2389_v29, 16  ;;  %v1738_v37 = vcombine.low %v924_v28, %v2389_v29  ;;  %v956_v40 = vrot.slane %v954_v33, 5  ;;  %v960_v41 = vrot.slane %v958_v27, 4  ;;  %v1223_v50 = vld [vmem:[#allocation3] sm:$0xe] }
 0x2c8   :  { %v971_v38 = vrot.slane %v969_v30, 4  ;;  %v974_v39 = vrot.slane %v972_v31, 5  ;;  %v951_v43 = vor.u32 %v950_v60, %v947_v35  ;;  %v978_v44 = vshll.u32 %v2389_v29, 16  ;;  %v1224_v14 = vld [vmem:[#allocation3 + $0xc] sm:$0xe] }
 0x2c9   :  { %1884 = vmatmul.mubr.bf16.vlgmr.msra.gmra.mxu0 %v1738_v37  ;;  %v984_v45 = vrot.slane %v982_v36, 4  ;;  %v961_v46 = vor.u32 %v960_v41, %v956_v40  ;;  %v988_v9 = vshll.u32 %v943_v42, 16  ;;  %v1231_v8 = vrot.slane %v923_v21, 5 }
 0x2ca   :  { %v975_v0 = vor.u32 %v974_v39, %v971_v38  ;;  %v952_v47 = vrot.slane %v951_v43, 4  ;;  %v980_v48 = vrot.slane %v978_v44, 5  ;;  %v966_v11 = vrot.slane %v964_v34, 5 }
 0x2cb   :  { %v962_v52 = vrot.slane %v961_v46, 4  ;;  %v1233_v51 = vrot.slane %v1231_v8, 4  ;;  %v1747_v57 = vrot.slane %v1223_v50, 9  ;;  %v1234_v58 = vrot.slane %v942_v22, 5 }
 0x2cc   :  { %v976_v53 = vrot.slane %v975_v0, 4  ;;  %v957_v20 = vsel %vm2190_vm14, %v952_v47, %v956_v40  ;;  %v985_v55 = vor.u32 %v984_v45, %v980_v48  ;;  %v990_v63 = vrot.slane %v988_v9, 5 }
 0x2cd   :  { %v967_v56 = vsel %vm2190_vm14, %v962_v52, %v966_v11  ;;  %v1235_v1 = vsel %vm2197_vm15, %v1233_v51, %v1234_v58  ;;  %v1232_v3 = vsel %vm2197_vm15, %v1747_v57, %v1231_v8  ;;  %v1238_v13 = vrot.slane %v2389_v29, 5 }
 0x2ce   :  { %v1727_v59 = vcombine.low %v957_v20, %v967_v56  ;;  %v981_v61 = vsel %vm2190_vm14, %v976_v53, %v980_v48  ;;  %v986_v62 = vrot.slane %v985_v55, 4  ;;  %v1749_v5 = vcombine.low %v1232_v3, %v1235_v1 }
 0x2cf   :  { %v1240_v15 = vrot.slane %v1238_v13, 4  ;;  %v1748_v16 = vrot.slane %v1224_v14, 9  ;;  %v1241_v18 = vrot.slane %v943_v42, 5 }
 0x2d0   :  { %1863 = vmatprep.mubr.bf16.mxu1 %v1727_v59  ;;  %v991_v54 = vsel %vm2190_vm14, %v986_v62, %v990_v63  ;;  %vm2574_vm14 = vcmask 261120  }
 0x2d1   :  { %v1728_v2 = vcombine.low %v981_v61, %v991_v54  ;;  %v1242_v19 = vsel %vm2197_vm15, %v1240_v15, %v1241_v18  ;;  %v1239_v21 = vsel %vm2197_vm15, %v1748_v16, %v1238_v13  ;;  %vm2575_vm15 = vmmov %vm2572_vm3 }
 0x2d2   :  { %v1750_v22 = vcombine.low %v1239_v21, %v1242_v19  ;;  %vm2577_vm6 = vmmov %vm2574_vm14 }
 0x2d3   :  { %1864 = vmatmul.mubr.bf16.vlgmr.msra.gmra.mxu1 %v1728_v2 }
 0x2d4   :  { %1888 = vmatpush3.bf16.msra.mxu1 %v2331_v23  ;;  %1903 = vmatprep.mubr.bf16.mxu1 %v1749_v5  ;;  %v1967_v23 = vld [vmem:[#allocation9 + $0x80] sm:$0xff]  }
 0x2d5   :  { %1889 = vmatprep.subr.bf16.mxu1 %v1961_v4 }
 0x2d8   :  { %1890 = vmatpush3.bf16.msra.mxu1 %v1961_v4 }
 0x2d9   :  { %1891 = vmatprep.subr.bf16.mxu1 %v1962_v6 }
 0x2dc   :  { %1892 = vmatpush3.bf16.msra.mxu1 %v1962_v6 }
 0x2dd   :  { %1893 = vmatprep.subr.bf16.mxu1 %v1963_v7 }
 0x2e0   :  { %1894 = vmatpush3.bf16.msra.mxu1 %v1963_v7 }
 0x2e1   :  { %1895 = vmatprep.subr.bf16.mxu1 %v1964_v10 }
 0x2e4   :  { %1896 = vmatpush3.bf16.msra.mxu1 %v1964_v10 }
 0x2e5   :  { %1897 = vmatprep.subr.bf16.mxu1 %v1965_v17 }
 0x2e8   :  { %1898 = vmatpush3.bf16.msra.mxu1 %v1965_v17 }
 0x2e9   :  { %1899 = vmatprep.subr.bf16.mxu1 %v1966_v12 }
 0x2ec   :  { %1900 = vmatpush3.bf16.msra.mxu1 %v1966_v12 }
 0x2ed   :  { %1901 = vmatprep.subr.bf16.mxu1 %v1967_v23 }
 0x2f0   :  { %1902 = vmatpush3.bf16.msra.mxu1 %v1967_v23 }
 0x2f3   :  { %1904 = vmatmul.mubr.bf16.vlgmr.msra.gmra.mxu1 %v1750_v22 }
 0x389   :  { %v1885_v27 = vpop.f32.mrf.mxu0 }
 0x38b   :  { %v1208_v28 = vpop.f32.mrf.mxu0 }
 0x38d   :  { %v1886_v30 = vpop.f32.mrf.mxu0 }
 0x38f   :  { %v1211_v35 = vpop.f32.mrf.mxu0 }
 0x393   :  { %v1865_v24 = vpop.f32.mrf.mxu1 }
 0x394   :  { %v1217_v36 = vadd.f32 %v1885_v27, %v1865_v24 }
 0x395   :  { %v1099_v26 = vpop.f32.mrf.mxu1 }
 0x396   :  { %v1209_v34 = vadd.f32 %v1208_v28, %v1099_v26 }
 0x397   :  { %v1866_v32 = vpop.f32.mrf.mxu1 }
 0x398   :  { %v1220_v39 = vadd.f32 %v1886_v30, %v1866_v32 }
 0x399   :  { %v1102_v29 = vpop.f32.mrf.mxu1 }
 0x39a   :  { %v1212_v37 = vadd.f32 %v1211_v35, %v1102_v29 }
 0x3b3   :  { %v1905_v31 = vpop.f32.mrf.mxu1 }
 0x3b4   :  { %v2414_v40 = vadd.f32 %v1905_v31, %v1217_v36 }
 0x3b5   :  { %v1350_v33 = vpop.f32.mrf.mxu1 }
 0x3b6   :  { %v2412_v38 = vadd.f32 %v1350_v33, %v1209_v34  ;;  %v1382_v46 = vmul.f32 %v2414_v40, %v2414_v40 }
 0x3b7   :  { %v1906_v60 = vpop.f32.mrf.mxu1 }
 0x3b8   :  { %v1380_v42 = vmul.f32 %v2412_v38, %v2412_v38  ;;  %v2420_v43 = vadd.f32 %v1906_v60, %v1220_v39 }
 0x3b9   :  { %v1353_v25 = vpop.f32.mrf.mxu1 }
 0x3ba   :  { %v2416_v41 = vadd.f32 %v1353_v25, %v1212_v37  ;;  %v1383_v48 = vmul.f32 %v2420_v43, %v2420_v43 }
 0x3bc   :  { %v1371_v44 = vadd.f32 %v2416_v41, %v2412_v38  ;;  %v1381_v45 = vmul.f32 %v2416_v41, %v2416_v41 }
 0x3be   :  { %v1372_v0 = vadd.f32 %v1371_v44, %v2414_v40  ;;  %v1384_v47 = vadd.f32 %v1381_v45, %v1380_v42 }
 0x3c0   :  { %v1373_v9 = vadd.f32 %v1372_v0, %v2420_v43  ;;  %v1385_v50 = vadd.f32 %v1384_v47, %v1382_v46 }
 0x3c2   :  { %v1374_v8 = vrot.slane %v1373_v9, 4  ;;  %v1386_v52 = vadd.f32 %v1385_v50, %v1383_v48 }
 0x3c4   :  { %v1375_v11 = vadd.f32 %v1374_v8, %v1373_v9  ;;  %v1387_v53 = vrot.slane %v1386_v52, 4 }
 0x3c6   :  { %v1376_v20 = vrot.slane %v1375_v11, 2  ;;  %v1388_v55 = vadd.f32 %v1387_v53, %v1386_v52 }
 0x3c8   :  { %v1377_v51 = vadd.f32 %v1376_v20, %v1375_v11  ;;  %v1389_v56 = vrot.slane %v1388_v55, 2 }
 0x3ca   :  { %v1378_v57 = vrot.slane %v1377_v51, 1  ;;  %v1390_v58 = vadd.f32 %v1389_v56, %v1388_v55 }
 0x3cc   :  { %v1379_v59 = vadd.f32 %v1378_v57, %v1377_v51  ;;  %v1391_v61 = vrot.slane %v1390_v58, 1 }
 0x3ce   :  { %1398 = vrot.lane.b32.xlu1 %v1379_v59, %s2066_s18  ;;  %1394 = vrot.lane.b32.xlu0 %v1379_v59, %s2064_s2  ;;  %v1392_v62 = vadd.f32 %v1391_v61, %v1390_v58 }
 0x3d2   :  { %1402 = vrot.lane.b32.xlu1 %v1379_v59, %s2063_s0  ;;  %1456 = vrot.lane.b32.xlu0 %v1392_v62, %s2064_s2 }
 0x3d6   :  { %1406 = vrot.lane.b32.xlu1 %v1379_v59, %s2065_s17  ;;  %1460 = vrot.lane.b32.xlu0 %v1392_v62, %s2066_s18 }
 0x3da   :  { %1410 = vrot.lane.b32.xlu1 %v1379_v59, %s2067_s19  ;;  %1464 = vrot.lane.b32.xlu0 %v1392_v62, %s2063_s0 }
 0x3de   :  { %1414 = vrot.lane.b32.xlu1 %v1379_v59, %s2068_s20  ;;  %1468 = vrot.lane.b32.xlu0 %v1392_v62, %s2065_s17 }
 0x3e2   :  { %1418 = vrot.lane.b32.xlu1 %v1379_v59, %s2069_s21  ;;  %1472 = vrot.lane.b32.xlu0 %v1392_v62, %s2067_s19 }
 0x3e6   :  { %1422 = vrot.lane.b32.xlu1 %v1379_v59, %s2060_s29  ;;  %1476 = vrot.lane.b32.xlu0 %v1392_v62, %s2068_s20 }
 0x3ea   :  { %1426 = vrot.lane.b32.xlu1 %v1379_v59, %s2070_s22  ;;  %1480 = vrot.lane.b32.xlu0 %v1392_v62, %s2069_s21 }
 0x3ee   :  { %1430 = vrot.lane.b32.xlu1 %v1379_v59, %s2071_s23  ;;  %1484 = vrot.lane.b32.xlu0 %v1392_v62, %s2060_s29 }
 0x3f2   :  { %1434 = vrot.lane.b32.xlu1 %v1379_v59, %s2072_s24  ;;  %1488 = vrot.lane.b32.xlu0 %v1392_v62, %s2070_s22 }
 0x3f6   :  { %1438 = vrot.lane.b32.xlu1 %v1379_v59, %s2073_s25  ;;  %1492 = vrot.lane.b32.xlu0 %v1392_v62, %s2071_s23 }
 0x3fa   :  { %1442 = vrot.lane.b32.xlu1 %v1379_v59, %s2074_s26  ;;  %1496 = vrot.lane.b32.xlu0 %v1392_v62, %s2072_s24 }
 0x3fe   :  { %1446 = vrot.lane.b32.xlu1 %v1379_v59, %s2075_s27  ;;  %1500 = vrot.lane.b32.xlu0 %v1392_v62, %s2073_s25 }
 0x402   :  { %1450 = vrot.lane.b32.xlu1 %v1379_v59, %s2076_s28  ;;  %1504 = vrot.lane.b32.xlu0 %v1392_v62, %s2074_s26 }
 0x406   :  { %1512 = vrot.lane.b32.xlu1 %v1392_v62, %s2076_s28  ;;  %1508 = vrot.lane.b32.xlu0 %v1392_v62, %s2075_s27 }
 0x440   :  { %v1399_v63 = vpop.permute.xlu1 %1398  ;;  %v1395_v1 = vpop.permute.xlu0 %1394 }
 0x441   :  { %v1397_v13 = vadd.f32 %v1395_v1, %v1379_v59 }
 0x443   :  { %v1401_v15 = vadd.f32 %v1399_v63, %v1397_v13 }
 0x444   :  { %v1403_v54 = vpop.permute.xlu1 %1402  ;;  %v1457_v2 = vpop.permute.xlu0 %1456 }
 0x445   :  { %v1405_v19 = vadd.f32 %v1403_v54, %v1401_v15  ;;  %v1459_v21 = vadd.f32 %v1457_v2, %v1392_v62 }
 0x448   :  { %v1407_v3 = vpop.permute.xlu1 %1406  ;;  %v1461_v4 = vpop.permute.xlu0 %1460 }
 0x449   :  { %v1409_v22 = vadd.f32 %v1407_v3, %v1405_v19  ;;  %v1463_v27 = vadd.f32 %v1461_v4, %v1459_v21 }
 0x44c   :  { %v1411_v5 = vpop.permute.xlu1 %1410  ;;  %v1465_v6 = vpop.permute.xlu0 %1464 }
 0x44d   :  { %v1413_v32 = vadd.f32 %v1411_v5, %v1409_v22  ;;  %v1467_v28 = vadd.f32 %v1465_v6, %v1463_v27  ;;  %v1369_v6 = vld [vmem:[%s2545_s5] sm:$0x1]  ;;  %s2077_s5 = smov [#allocation10]  }
 0x450   :  { %v1415_v7 = vpop.permute.xlu1 %1414  ;;  %v1469_v10 = vpop.permute.xlu0 %1468 }
 0x451   :  { %v1417_v29 = vadd.f32 %v1415_v7, %v1413_v32  ;;  %v1471_v33 = vadd.f32 %v1469_v10, %v1467_v28 }
 0x454   :  { %v1419_v17 = vpop.permute.xlu1 %1418  ;;  %v1473_v12 = vpop.permute.xlu0 %1472 }
 0x455   :  { %v1421_v34 = vadd.f32 %v1419_v17, %v1417_v29  ;;  %v1475_v35 = vadd.f32 %v1473_v12, %v1471_v33  ;;  %v1370_v17 = vld [vmem:[%s2546_s6] sm:$0x1]  ;;  %s1684_s6 = sshll.u32 %s2077_s5, 4  ;;  %s1685_s6 = int_to_ptr.vmem [resolvable:$true] %s1684_s6 }
 0x456   :  { %p2037_p2 = scmp.lt.s32.totalorder %s1685_s6, %s1685_s6 }
 0x458   :  { %v1423_v23 = vpop.permute.xlu1 %1422  ;;  %v1477_v14 = vpop.permute.xlu0 %1476 }
 0x459   :  { %v1425_v60 = vadd.f32 %v1423_v23, %v1421_v34  ;;  %v1479_v25 = vadd.f32 %v1477_v14, %v1475_v35 }
 0x45c   :  { %v1427_v16 = vpop.permute.xlu1 %1426  ;;  %v1481_v18 = vpop.permute.xlu0 %1480 }
 0x45d   :  { %v1429_v39 = vadd.f32 %v1427_v16, %v1425_v60  ;;  %v1483_v42 = vadd.f32 %v1481_v18, %v1479_v25 }
 0x460   :  { %v1431_v24 = vpop.permute.xlu1 %1430  ;;  %v1485_v26 = vpop.permute.xlu0 %1484 }
 0x461   :  { %v1433_v44 = vadd.f32 %v1431_v24, %v1429_v39  ;;  %v1487_v0 = vadd.f32 %v1485_v26, %v1483_v42 }
 0x464   :  { %v1435_v30 = vpop.permute.xlu1 %1434  ;;  %v1489_v31 = vpop.permute.xlu0 %1488 }
 0x465   :  { %v1437_v47 = vadd.f32 %v1435_v30, %v1433_v44  ;;  %v1491_v48 = vadd.f32 %v1489_v31, %v1487_v0 }
 0x468   :  { %v1439_v36 = vpop.permute.xlu1 %1438  ;;  %v1493_v37 = vpop.permute.xlu0 %1492 }
 0x469   :  { %v1441_v9 = vadd.f32 %v1439_v36, %v1437_v47  ;;  %v1495_v52 = vadd.f32 %v1493_v37, %v1491_v48 }
 0x46c   :  { %v1443_v45 = vpop.permute.xlu1 %1442  ;;  %v1497_v46 = vpop.permute.xlu0 %1496 }
 0x46d   :  { %v1445_v11 = vadd.f32 %v1443_v45, %v1441_v9  ;;  %v1499_v53 = vadd.f32 %v1497_v46, %v1495_v52 }
 0x470   :  { %v1447_v50 = vpop.permute.xlu1 %1446  ;;  %v1501_v8 = vpop.permute.xlu0 %1500 }
 0x471   :  { %v1449_v20 = vadd.f32 %v1447_v50, %v1445_v11  ;;  %v1503_v56 = vadd.f32 %v1501_v8, %v1499_v53 }
 0x474   :  { %v1451_v55 = vpop.permute.xlu1 %1450  ;;  %v1505_v51 = vpop.permute.xlu0 %1504 }
 0x475   :  { %v1453_v57 = vadd.f32 %v1451_v55, %v1449_v20  ;;  %v1507_v58 = vadd.f32 %v1505_v51, %v1503_v56 }
 0x477   :  { %v1454_v61 = vmul.f32 0.001953125, %v1453_v57 }
 0x478   :  { %v1509_v59 = vpop.permute.xlu0 %1508  ;;  %v1513_v63 = vpop.permute.xlu1 %1512 }
 0x479   :  { %v1511_v62 = vadd.f32 %v1509_v59, %v1507_v58  ;;  %v1517_v54 = vmul.f32 %v1454_v61, %v1454_v61 }
 0x47b   :  { %v1515_v1 = vadd.f32 %v1513_v63, %v1511_v62 }
 0x47d   :  { %v1516_v2 = vmul.f32 0.001953125, %v1515_v1 }
 0x47f   :  { %v1518_v3 = vsub.f32 %v1516_v2, %v1517_v54 }
 0x481   :  { %v1519_v4 = vmax.f32 %v1518_v3, 0.0 }
 0x483   :  { %v1520_v5 = vadd.f32 1e-05, %v1519_v4 }
 0x485   :  { %1970 = vrsqrt.f32 %v1520_v5 }
 0x492   :  { %v1971_v7 = vpop.eup %1970 }
 0x493   :  { %v1522_v10 = vmul.f32 %v1971_v7, %v1369_v6 }
 0x495   :  { %v1523_v12 = vmul.f32 %v1522_v10, %v1454_v61  ;;  %v1529_v13 = vrot.slane %v1522_v10, %v2277_v49 }
 0x497   :  { %v1524_v23 = vsub.f32 %v1370_v17, %v1523_v12  ;;  %1533 = vrot.lane.b32.xlu1 %v1529_v13, %s2075_s27  ;;  %1530 = vrot.lane.b32.xlu0 %v1529_v13, %s2076_s28 }
 0x499   :  { %v1602_v14 = vrot.slane %v1524_v23, %v2277_v49 }
 0x49b   :  { %1536 = vrot.lane.b32.xlu0 %v1529_v13, %s2074_s26  ;;  %1603 = vrot.lane.b32.xlu1 %v1602_v14, %s2076_s28 }
 0x49f   :  { %1539 = vrot.lane.b32.xlu0 %v1529_v13, %s2073_s25  ;;  %1606 = vrot.lane.b32.xlu1 %v1602_v14, %s2075_s27 }
 0x4a3   :  { %1542 = vrot.lane.b32.xlu0 %v1529_v13, %s2072_s24  ;;  %1609 = vrot.lane.b32.xlu1 %v1602_v14, %s2074_s26 }
 0x4a7   :  { %1545 = vrot.lane.b32.xlu0 %v1529_v13, %s2071_s23  ;;  %1612 = vrot.lane.b32.xlu1 %v1602_v14, %s2073_s25 }
 0x4ab   :  { %1548 = vrot.lane.b32.xlu0 %v1529_v13, %s2070_s22  ;;  %1615 = vrot.lane.b32.xlu1 %v1602_v14, %s2072_s24 }
 0x4af   :  { %1551 = vrot.lane.b32.xlu0 %v1529_v13, %s2060_s29  ;;  %1618 = vrot.lane.b32.xlu1 %v1602_v14, %s2071_s23 }
 0x4b3   :  { %1554 = vrot.lane.b32.xlu0 %v1529_v13, %s2069_s21  ;;  %1621 = vrot.lane.b32.xlu1 %v1602_v14, %s2070_s22 }
 0x4b7   :  { %1557 = vrot.lane.b32.xlu0 %v1529_v13, %s2068_s20  ;;  %1624 = vrot.lane.b32.xlu1 %v1602_v14, %s2060_s29  ;;  %s2032_s29 = scalar_lea.vmem %s1685_s6, 512 }
 0x4b8   :  { %p2033_p1 = scmp.ne.s32.totalorder %s1685_s6, %s2032_s29  ;;  %p2038_p3 = scmp.lt.s32.totalorder %s2032_s29, %s2032_s29 }
 0x4ba   :  { %p2039_p4 = por %p2038_p3, %p2037_p2 }
 0x4bb   :  { %1560 = vrot.lane.b32.xlu0 %v1529_v13, %s2067_s19  ;;  %1627 = vrot.lane.b32.xlu1 %v1602_v14, %s2069_s21 }
 0x4bc   :  { %p2040_p5 = pnand %p2039_p4, %p2033_p1 }
 0x4bf   :  { %1563 = vrot.lane.b32.xlu0 %v1529_v13, %s2065_s17  ;;  %1630 = vrot.lane.b32.xlu1 %v1602_v14, %s2068_s20 }
 0x4c3   :  { %1566 = vrot.lane.b32.xlu0 %v1529_v13, %s2063_s0  ;;  %1633 = vrot.lane.b32.xlu1 %v1602_v14, %s2067_s19 }
 0x4c7   :  { %1569 = vrot.lane.b32.xlu0 %v1529_v13, %s2066_s18  ;;  %1636 = vrot.lane.b32.xlu1 %v1602_v14, %s2065_s17 }
 0x4cb   :  { %1572 = vrot.lane.b32.xlu0 %v1529_v13, %s2064_s2  ;;  %1639 = vrot.lane.b32.xlu1 %v1602_v14, %s2063_s0 }
 0x4cf   :  { %1642 = vrot.lane.b32.xlu0 %v1602_v14, %s2066_s18  ;;  %1645 = vrot.lane.b32.xlu1 %v1602_v14, %s2064_s2 }
 0x509   :  { %v1534_v15 = vpop.permute.xlu1 %1533  ;;  %v1531_v16 = vpop.permute.xlu0 %1530 }
 0x50a   :  { %v1575_v25 = vsel %vm2572_vm3, %v1522_v10, %v1531_v16 }
 0x50b   :  { %v1576_v39 = vsel %vm727_vm5, %v1575_v25, %v1534_v15 }
 0x50d   :  { %v1537_v18 = vpop.permute.xlu0 %1536  ;;  %v1604_v19 = vpop.permute.xlu1 %1603 }
 0x50e   :  { %v1577_v45 = vsel %vm2573_vm7, %v1576_v39, %v1537_v18  ;;  %v1648_v47 = vsel %vm2575_vm15, %v1524_v23, %v1604_v19 }
 0x511   :  { %v1540_v21 = vpop.permute.xlu0 %1539  ;;  %v1607_v22 = vpop.permute.xlu1 %1606 }
 0x512   :  { %v1578_v46 = vsel %vm2574_vm14, %v1577_v45, %v1540_v21  ;;  %v1649_v8 = vsel %vm727_vm5, %v1648_v47, %v1607_v22  ;;  %vm2578_vm5 = vcmask 850944  }
 0x515   :  { %v1543_v24 = vpop.permute.xlu0 %1542  ;;  %v1610_v26 = vpop.permute.xlu1 %1609 }
 0x516   :  { %v1579_v0 = vsel %vm733_vm10, %v1578_v46, %v1543_v24  ;;  %v1650_v11 = vsel %vm2576_vm2, %v1649_v8, %v1610_v26 }
 0x519   :  { %v1546_v27 = vpop.permute.xlu0 %1545  ;;  %v1613_v32 = vpop.permute.xlu1 %1612 }
 0x51a   :  { %v1580_v48 = vsel %vm735_vm11, %v1579_v0, %v1546_v27  ;;  %v1651_v20 = vsel %vm2577_vm6, %v1650_v11, %v1613_v32 }
 0x51d   :  { %v1549_v28 = vpop.permute.xlu0 %1548  ;;  %v1616_v29 = vpop.permute.xlu1 %1615 }
 0x51e   :  { %v1581_v52 = vsel %vm737_vm12, %v1580_v48, %v1549_v28  ;;  %v1652_v51 = vsel %vm733_vm10, %v1651_v20, %v1616_v29  ;;  %vm2580_vm10 = vcmask 982016  }
 0x521   :  { %v1552_v30 = vpop.permute.xlu0 %1551  ;;  %v1619_v31 = vpop.permute.xlu1 %1618 }
 0x522   :  { %v1582_v53 = vsel %vm253_vm9, %v1581_v52, %v1552_v30  ;;  %v1653_v59 = vsel %vm735_vm11, %v1652_v51, %v1619_v31  ;;  %vm2581_vm11 = vmmov %vm2578_vm5 }
 0x525   :  { %v1555_v33 = vpop.permute.xlu0 %1554  ;;  %v1622_v34 = vpop.permute.xlu1 %1621 }
 0x526   :  { %v1583_v55 = vsel %vm740_vm13, %v1582_v53, %v1555_v33  ;;  %v1654_v62 = vsel %vm737_vm12, %v1653_v59, %v1622_v34  ;;  %vm2583_vm12 = vmmov %vm2580_vm10 }
 0x529   :  { %v1558_v35 = vpop.permute.xlu0 %1557  ;;  %v1625_v60 = vpop.permute.xlu1 %1624 }
 0x52a   :  { %v1584_v56 = vsel %vm742_vm0, %v1583_v55, %v1558_v35  ;;  %v1655_v1 = vsel %vm253_vm9, %v1654_v62, %v1625_v60  ;;  %vm2582_vm9 = vmmov %vm2579_vm8 }
 0x52d   :  { %v1561_v36 = vpop.permute.xlu0 %1560  ;;  %v1628_v37 = vpop.permute.xlu1 %1627 }
 0x52e   :  { %v1585_v61 = vsel %vm744_vm4, %v1584_v56, %v1561_v36  ;;  %v1656_v2 = vsel %vm740_vm13, %v1655_v1, %v1628_v37 }
 0x531   :  { %v1564_v42 = vpop.permute.xlu0 %1563  ;;  %v1631_v44 = vpop.permute.xlu1 %1630 }
 0x532   :  { %v1586_v63 = vsel %vm746_vm1, %v1585_v61, %v1564_v42  ;;  %v1657_v6 = vsel %vm742_vm0, %v1656_v2, %v1631_v44 }
 0x535   :  { %v1567_v9 = vpop.permute.xlu0 %1566  ;;  %v1634_v50 = vpop.permute.xlu1 %1633 }
 0x536   :  { %v1587_v54 = vsel %vm2578_vm5, %v1586_v63, %v1567_v9  ;;  %v1658_v10 = vsel %vm744_vm4, %v1657_v6, %v1634_v50 }
 0x539   :  { %v1570_v57 = vpop.permute.xlu0 %1569  ;;  %v1637_v58 = vpop.permute.xlu1 %1636 }
 0x53a   :  { %v1588_v3 = vsel %vm2579_vm8, %v1587_v54, %v1570_v57  ;;  %v1659_v12 = vsel %vm746_vm1, %v1658_v10, %v1637_v58 }
 0x53d   :  { %v1573_v4 = vpop.permute.xlu0 %1572  ;;  %v1640_v5 = vpop.permute.xlu1 %1639 }
 0x53e   :  { %v1589_v7 = vsel %vm2580_vm10, %v1588_v3, %v1573_v4  ;;  %v1660_v13 = vsel %vm2581_vm11, %v1659_v12, %v1640_v5 }
 0x53f   :  { %v1593_v17 = vrot.slane %v1589_v7, %v2277_v49 }
 0x541   :  { %v1643_v23 = vpop.permute.xlu0 %1642  ;;  %v1646_v14 = vpop.permute.xlu1 %1645  ;;  %v1594_v16 = vmul.f32 %v1593_v17, %v2412_v38  ;;  %v1595_v19 = vmul.f32 %v1593_v17, %v2416_v41  ;;  %v1596_v21 = vmul.f32 %v1593_v17, %v2414_v40  ;;  %v1597_v22 = vmul.f32 %v1593_v17, %v2420_v43 }
 0x542   :  { %v1661_v15 = vsel %vm2582_vm9, %v1660_v13, %v1643_v23 }
 0x543   :  { %v1662_v18 = vsel %vm2583_vm12, %v1661_v15, %v1646_v14 }
 0x544   :  { %v1666_v24 = vrot.slane %v1662_v18, %v2277_v49 }
 0x546   :  { %v1667_v26 = vadd.f32 %v1666_v24, %v1594_v16  ;;  %v1668_v27 = vadd.f32 %v1666_v24, %v1595_v19  ;;  %v1669_v32 = vadd.f32 %v1666_v24, %v1596_v21  ;;  %v1670_v28 = vadd.f32 %v1666_v24, %v1597_v22 }
 0x548   :  { %v1671_v29 = vmax.f32 %v1667_v26, 0.0  ;;  %v1672_v30 = vmax.f32 %v1668_v27, 0.0  ;;  %v1673_v31 = vmax.f32 %v1669_v32, 0.0  ;;  %v1674_v38 = vmax.f32 %v1670_v28, 0.0 }
 0x54a   :  { %1675 = vst [vmem:[#allocation10] sm:$0xff] %v1671_v29  ;;  %1676 = vst [vmem:[#allocation10 + $0x8] sm:$0xff] %v1672_v30 }
 0x54b   :  { %1677 = vst [vmem:[#allocation10 + $0x10] sm:$0xff] %v1673_v31  ;;  %1678 = vst [vmem:[#allocation10 + $0x18] sm:$0xff] %v1674_v38 }
 0x54c   :  { %2043 = shalt.err (!%p2040_p5)
}
 0x54d   :  { %s2078_s13 = smov 128  }
 0x54e   :  { %1690 = dma.vmem_to_hbm [thread:$0]  %s1685_s6, 512, %s2547_s7, [#allocation6], %s2078_s13, %s2078_s13, %s2076_s28  }
 0x54f   :  { %2056 = dma.done.wait [#allocation6], 512  }
 0x550   :  { %2057 = vsyncadd [#allocation6], 4294966784 }
 0x551   :  { %1694 = vsyncpa [#allocation5], 1 }
 0x552   :  { %1695 = vsyncpa [#allocation8], 1 }
 0x553   :  { %1696 = vsyncpa [#allocation6], 1 }

</bundles_post_ra>
